<compile_context>
chip_gen: v7x
topology: tpu7x:2x2x1
jax: 0.10.0
libtpu: 0.0.40
codegen_flags: <defaults>
</compile_context>

<pallas_src>
import functools

import jax
import jax.numpy as jnp
from jax.experimental import pallas as pl
from jax.experimental.pallas import tpu as pltpu

VMEM = pltpu.MemorySpace.VMEM


# --------------------------------------------------------------------------
# Single fused kernel: static fold + hoisted input matmul + GRU + final Linear
# --------------------------------------------------------------------------
def _fused_kernel(tf_ref, xs_ref, wst_ref, bst_ref, wl_ref, bl_ref, wr_ref,
                  wtp_ref, btp_ref, wih_ref, whh_ref, bih_ref, bhh_ref,
                  wfin_ref, bfin_ref, o_ref, gx_s, *, T, B, N, H, G):
    BN = B * N

    # ---- static station embedding (node projection + self-loop SAGEConv) ----
    h = jnp.dot(xs_ref[...], wst_ref[...],
                preferred_element_type=jnp.float32) + bst_ref[...]
    h = jnp.maximum(h, 0.0)                                   # Linear + ReLU (.relu() idempotent)
    # self-loop SAGEConv: mean over the single self edge == identity, so
    #   emb = h @ (W_l + W_r) + b_l ; then post-HeteroConv ReLU (dropout = id).
    emb = jnp.dot(h, wl_ref[...] + wr_ref[...],
                  preferred_element_type=jnp.float32) + bl_ref[...]
    emb = jnp.maximum(emb, 0.0)                               # (N, H)

    # ---- fold time_projection + concat([tf_proj, emb]) into W_ih ----
    wih = wih_ref[...]
    wih_top = wih[0:H, :]                                     # acts on time-projected features
    wih_bot = wih[H:2 * H, :]                                 # acts on broadcast station embedding
    weff = jnp.dot(wtp_ref[...], wih_top,
                   preferred_element_type=jnp.float32)        # (Ft_pad, 3G)
    nconst = (jnp.dot(emb, wih_bot, preferred_element_type=jnp.float32)
              + jnp.dot(btp_ref[...], wih_top, preferred_element_type=jnp.float32)
              + bih_ref[...])                                 # (N, 3G), time-invariant

    # ---- hoisted input-to-hidden matmul: ONE matmul, ONE lane-dense scratch ----
    gx_s[...] = jnp.dot(tf_ref[...], weff,
                        preferred_element_type=jnp.float32)   # (T*B*N, 3G), rows (t, b, n)

    # ---- split gate constants / weights ONCE, outside the recurrent loop ----
    nconst_bn = jnp.concatenate([nconst] * B, axis=0)         # (B*N, 3G), rows (b, n)
    bhh = bhh_ref[...]
    nb_r = nconst_bn[:, 0:G] + bhh[:, 0:G]
    nb_z = nconst_bn[:, G:2 * G] + bhh[:, G:2 * G]
    nc_n = nconst_bn[:, 2 * G:3 * G]
    bhh_n = bhh[:, 2 * G:3 * G]                               # must stay inside r * (.)
    whh = whh_ref[...]                                        # (G, 3G)

    def step(t, hs):
        row = pl.multiple_of(t * BN, BN)
        gx = gx_s[pl.ds(row, BN), :]                          # (BN, 3G)
        # single recurrent matmul per step, all three gates at once
        gh = jnp.dot(hs, whh, preferred_element_type=jnp.float32)   # (BN, 3G)
        r = jax.nn.sigmoid(gx[:, 0:G] + nb_r + gh[:, 0:G])
        z = jax.nn.sigmoid(gx[:, G:2 * G] + nb_z + gh[:, G:2 * G])
        n = jnp.tanh(gx[:, 2 * G:3 * G] + nc_n + r * (gh[:, 2 * G:3 * G] + bhh_n))
        return (1.0 - z) * n + z * hs

    h_last = jax.lax.fori_loop(0, T, step, jnp.zeros((BN, G), jnp.float32),
                               unroll=True)

    # fused lin_final epilogue: single store, no extra HBM trip
    o_ref[...] = (jnp.dot(h_last, wfin_ref[...],
                          preferred_element_type=jnp.float32) + bfin_ref[...])


def hetero_gnn_fused(tf, x_station, p_lin_station, p_sage_self, wtp, btp,
                     p_gru, wfin, bfin, *, T, B, N, H, G):
    P = wfin.shape[1]
    kernel = functools.partial(_fused_kernel, T=T, B=B, N=N, H=H, G=G)
    out = pl.pallas_call(
        kernel,
        out_shape=jax.ShapeDtypeStruct((B * N, P), jnp.float32),
        in_specs=[pl.BlockSpec(memory_space=VMEM)] * 15,
        out_specs=pl.BlockSpec(memory_space=VMEM),
        scratch_shapes=[pltpu.VMEM((T * B * N, 3 * G), jnp.float32)],
    )(tf, x_station,
      p_lin_station[0], p_lin_station[1],
      p_sage_self[0], p_sage_self[1], p_sage_self[2],
      wtp, btp,
      p_gru[0], p_gru[1], p_gru[2], p_gru[3],
      wfin, bfin)
    return out.reshape(B, N, P)


# --------------------------------------------------------------------------
# Forward (wrapper only concatenates / reorders the raw narrow features)
# --------------------------------------------------------------------------
def hetero_gnn_forward(x_dict, params):
    flows = x_dict["features"]["station_flows"]        # (B, T, N, Ff)
    hours = x_dict["features"]["hour_of_day"]          # (B, T, N, 1)
    days = x_dict["features"]["day_of_week"]           # (B, T, N, 1)
    weather = x_dict["features"]["weather"]            # (B, T, N, Fw)
    B, T, N, _ = flows.shape
    H = params["lin_station"][0].shape[1]
    G = params["gru_units"]

    x_station = x_dict["features"]["station_poi"][0]   # (N, Fs)

    # NOTE: the poi_category / census_zone relations of the original module are
    # dead w.r.t. the returned tensor (their HeteroConv outputs are discarded),
    # so they are not computed at all.

    time_feat = jnp.concatenate([flows, hours, days, weather], axis=-1)  # (B,T,N,Ft)
    Ft = time_feat.shape[-1]
    Ft_pad = ((Ft + 7) // 8) * 8
    if Ft_pad != Ft:
        time_feat = jnp.pad(
            time_feat, ((0, 0), (0, 0), (0, 0), (0, Ft_pad - Ft)))

    # time-major rows ordered (t, b, n): one hidden state of shape (B*N, G),
    # batch folded into the kernel (no grid -> no per-batch serial grid steps).
    tf = jnp.transpose(time_feat, (1, 0, 2, 3)).reshape(T * B * N, Ft_pad)

    wtp, btp = params["time_proj"]
    if Ft_pad != Ft:
        wtp = jnp.pad(wtp, ((0, Ft_pad - Ft), (0, 0)))  # zero rows keep fold exact

    return hetero_gnn_fused(tf, x_station,
                            params["lin_station"], params["sage_self"],
                            wtp, btp, params["gru"],
                            params["lin_final"][0], params["lin_final"][1],
                            T=T, B=B, N=N, H=H, G=G)    # (B, N, P)


# --------------------------------------------------------------------------
# Deterministic parameter / input construction
# --------------------------------------------------------------------------
def make_params(key, *, feat_station, feat_poi, feat_census, feat_time, H, G, P):
    ks = jax.random.split(key, 23)

    def dense(k, shape):
        return (0.1 * jax.random.normal(k, shape)).astype(jnp.float32)

    return {
        "lin_station": (dense(ks[0], (feat_station, H)), dense(ks[1], (1, H))),
        # The poi/census projections and SAGE convs exist in the module but do
        # not influence its output; kept here only for interface parity.
        "lin_poi": (dense(ks[2], (feat_poi, H)), dense(ks[3], (1, H))),
        "lin_census": (dense(ks[4], (feat_census, H)), dense(ks[5], (1, H))),
        "time_proj": (dense(ks[6], (feat_time, H)), dense(ks[7], (1, H))),
        "sage_poi": (dense(ks[8], (H, H)), dense(ks[9], (1, H)), dense(ks[10], (H, H))),
        "sage_cz": (dense(ks[11], (H, H)), dense(ks[12], (1, H)), dense(ks[13], (H, H))),
        # SAGEConv params: (W_l, b_l, W_r) -- lin_r has no bias in PyG
        "sage_self": (dense(ks[14], (H, H)), dense(ks[15], (1, H)), dense(ks[16], (H, H))),
        # GRU: W_ih (2H, 3G), W_hh (G, 3G), b_ih (1, 3G), b_hh (1, 3G), gates r|z|n
        # (PyTorch checkpoints store (3G, 2H)/(3G, G); transpose before use.)
        "gru": (dense(ks[17], (2 * H, 3 * G)), dense(ks[18], (G, 3 * G)),
                dense(ks[19], (1, 3 * G)), dense(ks[20], (1, 3 * G))),
        "gru_units": G,
        "lin_final": (dense(ks[21], (G, P)), dense(ks[22], (1, P))),
    }


if __name__ == "__main__":
    key = jax.random.PRNGKey(0)
    kp, kd = jax.random.split(key)

    # small shapes consistent with the module's forward
    B, T, N = 2, 8, 16                 # batch, seq_length, num_stations
    H, G, P = 32, 32, 4                # hidden_channels, hidden_units_gru, prediction_length
    Np, Nc = 10, 4                     # num poi categories, num census zones
    Fflow, Fh, Fd, Fw = 2, 1, 1, 3     # per-timestep feature widths
    Fs, Fp, Fc = 6, 5, 7               # static node feature widths
    Ft = Fflow + Fh + Fd + Fw

    params = make_params(kp, feat_station=Fs, feat_poi=Fp, feat_census=Fc,
                         feat_time=Ft, H=H, G=G, P=P)

    dks = jax.random.split(kd, 10)
    x_dict = {
        "features": {
            "station_flows": jax.random.normal(dks[0], (B, T, N, Fflow), jnp.float32),
            "hour_of_day": jax.random.normal(dks[1], (B, T, N, Fh), jnp.float32),
            "day_of_week": jax.random.normal(dks[2], (B, T, N, Fd), jnp.float32),
            "weather": jax.random.normal(dks[3], (B, T, N, Fw), jnp.float32),
            "station_poi": jax.random.normal(dks[4], (1, N, Fs), jnp.float32),
            "poi_category": jax.random.normal(dks[5], (1, Np, Fp), jnp.float32),
            "census_zone": jax.random.normal(dks[6], (1, Nc, Fc), jnp.float32),
        },
        "edge_indices": {
            ("station", "near_poi_category", "poi_category"): jnp.stack(
                [jax.random.randint(dks[7], (40,), 0, N),
                 jax.random.randint(dks[8], (40,), 0, Np)], axis=0
            ).astype(jnp.int32)[None],                                   # (1, 2, 40)
            ("station", "located_in", "census_zone"): jnp.stack(
                [jnp.arange(N, dtype=jnp.int32),
                 jax.random.randint(dks[9], (N,), 0, Nc).astype(jnp.int32)], axis=0
            )[None],                                                     # (1, 2, 16)
        },
    }

    out = hetero_gnn_forward(x_dict, params)
    out = jax.block_until_ready(out)
    assert out.shape == (B, N, P), out.shape
    assert jnp.all(jnp.isfinite(out))
    print("KERNEL_OK")
</pallas_src>

<mosaic_0001>
module attributes {stable_mosaic.version = 11 : i64} {
  func.func @_fused_kernel(%arg0: memref<256x8xf32, #tpu.memory_space<vmem>>, %arg1: memref<16x6xf32, #tpu.memory_space<vmem>>, %arg2: memref<6x32xf32, #tpu.memory_space<vmem>>, %arg3: memref<1x32xf32, #tpu.memory_space<vmem>>, %arg4: memref<32x32xf32, #tpu.memory_space<vmem>>, %arg5: memref<1x32xf32, #tpu.memory_space<vmem>>, %arg6: memref<32x32xf32, #tpu.memory_space<vmem>>, %arg7: memref<8x32xf32, #tpu.memory_space<vmem>>, %arg8: memref<1x32xf32, #tpu.memory_space<vmem>>, %arg9: memref<64x96xf32, #tpu.memory_space<vmem>>, %arg10: memref<32x96xf32, #tpu.memory_space<vmem>>, %arg11: memref<1x96xf32, #tpu.memory_space<vmem>>, %arg12: memref<1x96xf32, #tpu.memory_space<vmem>>, %arg13: memref<32x4xf32, #tpu.memory_space<vmem>>, %arg14: memref<1x4xf32, #tpu.memory_space<vmem>>, %arg15: memref<32x4xf32, #tpu.memory_space<vmem>>, %arg16: memref<256x96xf32, #tpu.memory_space<vmem>>) attributes {dimension_semantics = [], scalar_prefetch = 0 : i64, scratch_operands = 1 : i64, tpu.core_type = #tpu.core_type<tc>} {
    %c0 = arith.constant 0 : index
    %c0_0 = arith.constant 0 : index
    %0 = vector.load %arg1[%c0, %c0_0] : memref<16x6xf32, #tpu.memory_space<vmem>>, vector<16x6xf32>
    %c0_1 = arith.constant 0 : index
    %c0_2 = arith.constant 0 : index
    %1 = vector.load %arg2[%c0_1, %c0_2] : memref<6x32xf32, #tpu.memory_space<vmem>>, vector<6x32xf32>
    %cst = arith.constant dense<0.000000e+00> : vector<16x32xf32>
    %2 = tpu.matmul %0, %1, %cst {dimension_numbers = #tpu.dot_dimension_numbers<[1], [0], [0], [1], [0, 0, 1, 1], [], []>} : vector<16x6xf32>, vector<6x32xf32>, vector<16x32xf32> -> vector<16x32xf32>
    %c0_3 = arith.constant 0 : index
    %c0_4 = arith.constant 0 : index
    %3 = vector.load %arg3[%c0_3, %c0_4] : memref<1x32xf32, #tpu.memory_space<vmem>>, vector<1x32xf32>
    %4 = vector.broadcast %3 : vector<1x32xf32> to vector<16x32xf32>
    %5 = arith.addf %2, %4 : vector<16x32xf32>
    %cst_5 = arith.constant 0.000000e+00 : f32
    %6 = vector.broadcast %cst_5 : f32 to vector<16x32xf32>
    %7 = arith.maximumf %5, %6 : vector<16x32xf32>
    %c0_6 = arith.constant 0 : index
    %c0_7 = arith.constant 0 : index
    %8 = vector.load %arg4[%c0_6, %c0_7] : memref<32x32xf32, #tpu.memory_space<vmem>>, vector<32x32xf32>
    %c0_8 = arith.constant 0 : index
    %c0_9 = arith.constant 0 : index
    %9 = vector.load %arg6[%c0_8, %c0_9] : memref<32x32xf32, #tpu.memory_space<vmem>>, vector<32x32xf32>
    %10 = arith.addf %8, %9 : vector<32x32xf32>
    %cst_10 = arith.constant dense<0.000000e+00> : vector<16x32xf32>
    %11 = tpu.matmul %7, %10, %cst_10 {dimension_numbers = #tpu.dot_dimension_numbers<[1], [0], [0], [1], [0, 0, 1, 1], [], []>} : vector<16x32xf32>, vector<32x32xf32>, vector<16x32xf32> -> vector<16x32xf32>
    %c0_11 = arith.constant 0 : index
    %c0_12 = arith.constant 0 : index
    %12 = vector.load %arg5[%c0_11, %c0_12] : memref<1x32xf32, #tpu.memory_space<vmem>>, vector<1x32xf32>
    %13 = vector.broadcast %12 : vector<1x32xf32> to vector<16x32xf32>
    %14 = arith.addf %11, %13 : vector<16x32xf32>
    %cst_13 = arith.constant 0.000000e+00 : f32
    %15 = vector.broadcast %cst_13 : f32 to vector<16x32xf32>
    %16 = arith.maximumf %14, %15 : vector<16x32xf32>
    %c0_14 = arith.constant 0 : index
    %c0_15 = arith.constant 0 : index
    %17 = vector.load %arg9[%c0_14, %c0_15] : memref<64x96xf32, #tpu.memory_space<vmem>>, vector<64x96xf32>
    %18 = vector.extract_strided_slice %17 {offsets = [0, 0], sizes = [32, 96], strides = [1, 1]} : vector<64x96xf32> to vector<32x96xf32>
    %19 = vector.extract_strided_slice %17 {offsets = [32, 0], sizes = [32, 96], strides = [1, 1]} : vector<64x96xf32> to vector<32x96xf32>
    %c0_16 = arith.constant 0 : index
    %c0_17 = arith.constant 0 : index
    %20 = vector.load %arg7[%c0_16, %c0_17] : memref<8x32xf32, #tpu.memory_space<vmem>>, vector<8x32xf32>
    %cst_18 = arith.constant dense<0.000000e+00> : vector<8x96xf32>
    %21 = tpu.matmul %20, %18, %cst_18 {dimension_numbers = #tpu.dot_dimension_numbers<[1], [0], [0], [1], [0, 0, 1, 1], [], []>} : vector<8x32xf32>, vector<32x96xf32>, vector<8x96xf32> -> vector<8x96xf32>
    %cst_19 = arith.constant dense<0.000000e+00> : vector<16x96xf32>
    %22 = tpu.matmul %16, %19, %cst_19 {dimension_numbers = #tpu.dot_dimension_numbers<[1], [0], [0], [1], [0, 0, 1, 1], [], []>} : vector<16x32xf32>, vector<32x96xf32>, vector<16x96xf32> -> vector<16x96xf32>
    %c0_20 = arith.constant 0 : index
    %c0_21 = arith.constant 0 : index
    %23 = vector.load %arg8[%c0_20, %c0_21] : memref<1x32xf32, #tpu.memory_space<vmem>>, vector<1x32xf32>
    %cst_22 = arith.constant dense<0.000000e+00> : vector<1x96xf32>
    %24 = tpu.matmul %23, %18, %cst_22 {dimension_numbers = #tpu.dot_dimension_numbers<[1], [0], [0], [1], [0, 0, 1, 1], [], []>} : vector<1x32xf32>, vector<32x96xf32>, vector<1x96xf32> -> vector<1x96xf32>
    %25 = vector.broadcast %24 : vector<1x96xf32> to vector<16x96xf32>
    %26 = arith.addf %22, %25 : vector<16x96xf32>
    %c0_23 = arith.constant 0 : index
    %c0_24 = arith.constant 0 : index
    %27 = vector.load %arg11[%c0_23, %c0_24] : memref<1x96xf32, #tpu.memory_space<vmem>>, vector<1x96xf32>
    %28 = vector.broadcast %27 : vector<1x96xf32> to vector<16x96xf32>
    %29 = arith.addf %26, %28 : vector<16x96xf32>
    %c0_25 = arith.constant 0 : index
    %c0_26 = arith.constant 0 : index
    %30 = vector.load %arg0[%c0_25, %c0_26] : memref<256x8xf32, #tpu.memory_space<vmem>>, vector<256x8xf32>
    %cst_27 = arith.constant dense<0.000000e+00> : vector<256x96xf32>
    %31 = tpu.matmul %30, %21, %cst_27 {dimension_numbers = #tpu.dot_dimension_numbers<[1], [0], [0], [1], [0, 0, 1, 1], [], []>} : vector<256x8xf32>, vector<8x96xf32>, vector<256x96xf32> -> vector<256x96xf32>
    %c0_28 = arith.constant 0 : index
    %c0_29 = arith.constant 0 : index
    %32 = vector.load %arg16[%c0_28, %c0_29] : memref<256x96xf32, #tpu.memory_space<vmem>>, vector<256x96xf32>
    tpu.vector_store %arg16[%c0_28, %c0_29], %31 {strides = array<i32>} : memref<256x96xf32, #tpu.memory_space<vmem>>, vector<256x96xf32>,
    %33 = tpu.concatenate %29, %29 in 0 : vector<16x96xf32>, vector<16x96xf32> -> vector<32x96xf32>
    %c0_30 = arith.constant 0 : index
    %c0_31 = arith.constant 0 : index
    %34 = vector.load %arg12[%c0_30, %c0_31] : memref<1x96xf32, #tpu.memory_space<vmem>>, vector<1x96xf32>
    %35 = vector.extract_strided_slice %33 {offsets = [0, 0], sizes = [32, 32], strides = [1, 1]} : vector<32x96xf32> to vector<32x32xf32>
    %36 = vector.extract_strided_slice %34 {offsets = [0, 0], sizes = [1, 32], strides = [1, 1]} : vector<1x96xf32> to vector<1x32xf32>
    %37 = vector.broadcast %36 : vector<1x32xf32> to vector<32x32xf32>
    %38 = arith.addf %35, %37 : vector<32x32xf32>
    %39 = vector.extract_strided_slice %33 {offsets = [0, 32], sizes = [32, 32], strides = [1, 1]} : vector<32x96xf32> to vector<32x32xf32>
    %40 = vector.extract_strided_slice %34 {offsets = [0, 32], sizes = [1, 32], strides = [1, 1]} : vector<1x96xf32> to vector<1x32xf32>
    %41 = vector.broadcast %40 : vector<1x32xf32> to vector<32x32xf32>
    %42 = arith.addf %39, %41 : vector<32x32xf32>
    %43 = vector.extract_strided_slice %33 {offsets = [0, 64], sizes = [32, 32], strides = [1, 1]} : vector<32x96xf32> to vector<32x32xf32>
    %44 = vector.extract_strided_slice %34 {offsets = [0, 64], sizes = [1, 32], strides = [1, 1]} : vector<1x96xf32> to vector<1x32xf32>
    %c0_32 = arith.constant 0 : index
    %c0_33 = arith.constant 0 : index
    %45 = vector.load %arg10[%c0_32, %c0_33] : memref<32x96xf32, #tpu.memory_space<vmem>>, vector<32x96xf32>
    %cst_34 = arith.constant 0.000000e+00 : f32
    %46 = vector.broadcast %cst_34 : f32 to vector<32x32xf32>
    %c0_i32 = arith.constant 0 : i32
    %c32_i32 = arith.constant 32 : i32
    %47 = arith.muli %c0_i32, %c32_i32 : i32
    %48 = tpu.assume_multiple %47, 32 : i32
    %49 = arith.index_cast %48 : i32 to index
    %c0_35 = arith.constant 0 : index
    %50 = vector.load %arg16[%49, %c0_35] : memref<256x96xf32, #tpu.memory_space<vmem>>, vector<32x96xf32>
    %cst_36 = arith.constant dense<0.000000e+00> : vector<32x96xf32>
    %51 = tpu.matmul %46, %45, %cst_36 {dimension_numbers = #tpu.dot_dimension_numbers<[1], [0], [0], [1], [0, 0, 1, 1], [], []>} : vector<32x32xf32>, vector<32x96xf32>, vector<32x96xf32> -> vector<32x96xf32>
    %52 = vector.extract_strided_slice %50 {offsets = [0, 0], sizes = [32, 32], strides = [1, 1]} : vector<32x96xf32> to vector<32x32xf32>
    %53 = arith.addf %52, %38 : vector<32x32xf32>
    %54 = vector.extract_strided_slice %51 {offsets = [0, 0], sizes = [32, 32], strides = [1, 1]} : vector<32x96xf32> to vector<32x32xf32>
    %55 = arith.addf %53, %54 : vector<32x32xf32>
    %56 = arith.negf %55 : vector<32x32xf32>
    %57 = math.exp %56 : vector<32x32xf32>
    %cst_37 = arith.constant 1.000000e+00 : f32
    %58 = vector.broadcast %cst_37 : f32 to vector<32x32xf32>
    %59 = arith.addf %58, %57 : vector<32x32xf32>
    %60 = arith.divf %58, %59 : vector<32x32xf32>
    %61 = vector.extract_strided_slice %50 {offsets = [0, 32], sizes = [32, 32], strides = [1, 1]} : vector<32x96xf32> to vector<32x32xf32>
    %62 = arith.addf %61, %42 : vector<32x32xf32>
    %63 = vector.extract_strided_slice %51 {offsets = [0, 32], sizes = [32, 32], strides = [1, 1]} : vector<32x96xf32> to vector<32x32xf32>
    %64 = arith.addf %62, %63 : vector<32x32xf32>
    %65 = arith.negf %64 : vector<32x32xf32>
    %66 = math.exp %65 : vector<32x32xf32>
    %cst_38 = arith.constant 1.000000e+00 : f32
    %67 = vector.broadcast %cst_38 : f32 to vector<32x32xf32>
    %68 = arith.addf %67, %66 : vector<32x32xf32>
    %69 = arith.divf %67, %68 : vector<32x32xf32>
    %70 = vector.extract_strided_slice %50 {offsets = [0, 64], sizes = [32, 32], strides = [1, 1]} : vector<32x96xf32> to vector<32x32xf32>
    %71 = arith.addf %70, %43 : vector<32x32xf32>
    %72 = vector.extract_strided_slice %51 {offsets = [0, 64], sizes = [32, 32], strides = [1, 1]} : vector<32x96xf32> to vector<32x32xf32>
    %73 = vector.broadcast %44 : vector<1x32xf32> to vector<32x32xf32>
    %74 = arith.addf %72, %73 : vector<32x32xf32>
    %75 = arith.mulf %60, %74 : vector<32x32xf32>
    %76 = arith.addf %71, %75 : vector<32x32xf32>
    %77 = math.tanh %76 : vector<32x32xf32>
    %cst_39 = arith.constant 1.000000e+00 : f32
    %78 = vector.broadcast %cst_39 : f32 to vector<32x32xf32>
    %79 = arith.subf %78, %69 : vector<32x32xf32>
    %80 = arith.mulf %79, %77 : vector<32x32xf32>
    %81 = arith.mulf %69, %46 : vector<32x32xf32>
    %82 = arith.addf %80, %81 : vector<32x32xf32>
    %c1_i32 = arith.constant 1 : i32
    %c32_i32_40 = arith.constant 32 : i32
    %83 = arith.muli %c1_i32, %c32_i32_40 : i32
    %84 = tpu.assume_multiple %83, 32 : i32
    %85 = arith.index_cast %84 : i32 to index
    %c0_41 = arith.constant 0 : index
    %86 = vector.load %arg16[%85, %c0_41] : memref<256x96xf32, #tpu.memory_space<vmem>>, vector<32x96xf32>
    %cst_42 = arith.constant dense<0.000000e+00> : vector<32x96xf32>
    %87 = tpu.matmul %82, %45, %cst_42 {dimension_numbers = #tpu.dot_dimension_numbers<[1], [0], [0], [1], [0, 0, 1, 1], [], []>} : vector<32x32xf32>, vector<32x96xf32>, vector<32x96xf32> -> vector<32x96xf32>
    %88 = vector.extract_strided_slice %86 {offsets = [0, 0], sizes = [32, 32], strides = [1, 1]} : vector<32x96xf32> to vector<32x32xf32>
    %89 = arith.addf %88, %38 : vector<32x32xf32>
    %90 = vector.extract_strided_slice %87 {offsets = [0, 0], sizes = [32, 32], strides = [1, 1]} : vector<32x96xf32> to vector<32x32xf32>
    %91 = arith.addf %89, %90 : vector<32x32xf32>
    %92 = arith.negf %91 : vector<32x32xf32>
    %93 = math.exp %92 : vector<32x32xf32>
    %cst_43 = arith.constant 1.000000e+00 : f32
    %94 = vector.broadcast %cst_43 : f32 to vector<32x32xf32>
    %95 = arith.addf %94, %93 : vector<32x32xf32>
    %96 = arith.divf %94, %95 : vector<32x32xf32>
    %97 = vector.extract_strided_slice %86 {offsets = [0, 32], sizes = [32, 32], strides = [1, 1]} : vector<32x96xf32> to vector<32x32xf32>
    %98 = arith.addf %97, %42 : vector<32x32xf32>
    %99 = vector.extract_strided_slice %87 {offsets = [0, 32], sizes = [32, 32], strides = [1, 1]} : vector<32x96xf32> to vector<32x32xf32>
    %100 = arith.addf %98, %99 : vector<32x32xf32>
    %101 = arith.negf %100 : vector<32x32xf32>
    %102 = math.exp %101 : vector<32x32xf32>
    %cst_44 = arith.constant 1.000000e+00 : f32
    %103 = vector.broadcast %cst_44 : f32 to vector<32x32xf32>
    %104 = arith.addf %103, %102 : vector<32x32xf32>
    %105 = arith.divf %103, %104 : vector<32x32xf32>
    %106 = vector.extract_strided_slice %86 {offsets = [0, 64], sizes = [32, 32], strides = [1, 1]} : vector<32x96xf32> to vector<32x32xf32>
    %107 = arith.addf %106, %43 : vector<32x32xf32>
    %108 = vector.extract_strided_slice %87 {offsets = [0, 64], sizes = [32, 32], strides = [1, 1]} : vector<32x96xf32> to vector<32x32xf32>
    %109 = vector.broadcast %44 : vector<1x32xf32> to vector<32x32xf32>
    %110 = arith.addf %108, %109 : vector<32x32xf32>
    %111 = arith.mulf %96, %110 : vector<32x32xf32>
    %112 = arith.addf %107, %111 : vector<32x32xf32>
    %113 = math.tanh %112 : vector<32x32xf32>
    %cst_45 = arith.constant 1.000000e+00 : f32
    %114 = vector.broadcast %cst_45 : f32 to vector<32x32xf32>
    %115 = arith.subf %114, %105 : vector<32x32xf32>
    %116 = arith.mulf %115, %113 : vector<32x32xf32>
    %117 = arith.mulf %105, %82 : vector<32x32xf32>
    %118 = arith.addf %116, %117 : vector<32x32xf32>
    %c2_i32 = arith.constant 2 : i32
    %c32_i32_46 = arith.constant 32 : i32
    %119 = arith.muli %c2_i32, %c32_i32_46 : i32
    %120 = tpu.assume_multiple %119, 32 : i32
    %121 = arith.index_cast %120 : i32 to index
    %c0_47 = arith.constant 0 : index
    %122 = vector.load %arg16[%121, %c0_47] : memref<256x96xf32, #tpu.memory_space<vmem>>, vector<32x96xf32>
    %cst_48 = arith.constant dense<0.000000e+00> : vector<32x96xf32>
    %123 = tpu.matmul %118, %45, %cst_48 {dimension_numbers = #tpu.dot_dimension_numbers<[1], [0], [0], [1], [0, 0, 1, 1], [], []>} : vector<32x32xf32>, vector<32x96xf32>, vector<32x96xf32> -> vector<32x96xf32>
    %124 = vector.extract_strided_slice %122 {offsets = [0, 0], sizes = [32, 32], strides = [1, 1]} : vector<32x96xf32> to vector<32x32xf32>
    %125 = arith.addf %124, %38 : vector<32x32xf32>
    %126 = vector.extract_strided_slice %123 {offsets = [0, 0], sizes = [32, 32], strides = [1, 1]} : vector<32x96xf32> to vector<32x32xf32>
    %127 = arith.addf %125, %126 : vector<32x32xf32>
    %128 = arith.negf %127 : vector<32x32xf32>
    %129 = math.exp %128 : vector<32x32xf32>
    %cst_49 = arith.constant 1.000000e+00 : f32
    %130 = vector.broadcast %cst_49 : f32 to vector<32x32xf32>
    %131 = arith.addf %130, %129 : vector<32x32xf32>
    %132 = arith.divf %130, %131 : vector<32x32xf32>
    %133 = vector.extract_strided_slice %122 {offsets = [0, 32], sizes = [32, 32], strides = [1, 1]} : vector<32x96xf32> to vector<32x32xf32>
    %134 = arith.addf %133, %42 : vector<32x32xf32>
    %135 = vector.extract_strided_slice %123 {offsets = [0, 32], sizes = [32, 32], strides = [1, 1]} : vector<32x96xf32> to vector<32x32xf32>
    %136 = arith.addf %134, %135 : vector<32x32xf32>
    %137 = arith.negf %136 : vector<32x32xf32>
    %138 = math.exp %137 : vector<32x32xf32>
    %cst_50 = arith.constant 1.000000e+00 : f32
    %139 = vector.broadcast %cst_50 : f32 to vector<32x32xf32>
    %140 = arith.addf %139, %138 : vector<32x32xf32>
    %141 = arith.divf %139, %140 : vector<32x32xf32>
    %142 = vector.extract_strided_slice %122 {offsets = [0, 64], sizes = [32, 32], strides = [1, 1]} : vector<32x96xf32> to vector<32x32xf32>
    %143 = arith.addf %142, %43 : vector<32x32xf32>
    %144 = vector.extract_strided_slice %123 {offsets = [0, 64], sizes = [32, 32], strides = [1, 1]} : vector<32x96xf32> to vector<32x32xf32>
    %145 = vector.broadcast %44 : vector<1x32xf32> to vector<32x32xf32>
    %146 = arith.addf %144, %145 : vector<32x32xf32>
    %147 = arith.mulf %132, %146 : vector<32x32xf32>
    %148 = arith.addf %143, %147 : vector<32x32xf32>
    %149 = math.tanh %148 : vector<32x32xf32>
    %cst_51 = arith.constant 1.000000e+00 : f32
    %150 = vector.broadcast %cst_51 : f32 to vector<32x32xf32>
    %151 = arith.subf %150, %141 : vector<32x32xf32>
    %152 = arith.mulf %151, %149 : vector<32x32xf32>
    %153 = arith.mulf %141, %118 : vector<32x32xf32>
    %154 = arith.addf %152, %153 : vector<32x32xf32>
    %c3_i32 = arith.constant 3 : i32
    %c32_i32_52 = arith.constant 32 : i32
    %155 = arith.muli %c3_i32, %c32_i32_52 : i32
    %156 = tpu.assume_multiple %155, 32 : i32
    %157 = arith.index_cast %156 : i32 to index
    %c0_53 = arith.constant 0 : index
    %158 = vector.load %arg16[%157, %c0_53] : memref<256x96xf32, #tpu.memory_space<vmem>>, vector<32x96xf32>
    %cst_54 = arith.constant dense<0.000000e+00> : vector<32x96xf32>
    %159 = tpu.matmul %154, %45, %cst_54 {dimension_numbers = #tpu.dot_dimension_numbers<[1], [0], [0], [1], [0, 0, 1, 1], [], []>} : vector<32x32xf32>, vector<32x96xf32>, vector<32x96xf32> -> vector<32x96xf32>
    %160 = vector.extract_strided_slice %158 {offsets = [0, 0], sizes = [32, 32], strides = [1, 1]} : vector<32x96xf32> to vector<32x32xf32>
    %161 = arith.addf %160, %38 : vector<32x32xf32>
    %162 = vector.extract_strided_slice %159 {offsets = [0, 0], sizes = [32, 32], strides = [1, 1]} : vector<32x96xf32> to vector<32x32xf32>
    %163 = arith.addf %161, %162 : vector<32x32xf32>
    %164 = arith.negf %163 : vector<32x32xf32>
    %165 = math.exp %164 : vector<32x32xf32>
    %cst_55 = arith.constant 1.000000e+00 : f32
    %166 = vector.broadcast %cst_55 : f32 to vector<32x32xf32>
    %167 = arith.addf %166, %165 : vector<32x32xf32>
    %168 = arith.divf %166, %167 : vector<32x32xf32>
    %169 = vector.extract_strided_slice %158 {offsets = [0, 32], sizes = [32, 32], strides = [1, 1]} : vector<32x96xf32> to vector<32x32xf32>
    %170 = arith.addf %169, %42 : vector<32x32xf32>
    %171 = vector.extract_strided_slice %159 {offsets = [0, 32], sizes = [32, 32], strides = [1, 1]} : vector<32x96xf32> to vector<32x32xf32>
    %172 = arith.addf %170, %171 : vector<32x32xf32>
    %173 = arith.negf %172 : vector<32x32xf32>
    %174 = math.exp %173 : vector<32x32xf32>
    %cst_56 = arith.constant 1.000000e+00 : f32
    %175 = vector.broadcast %cst_56 : f32 to vector<32x32xf32>
    %176 = arith.addf %175, %174 : vector<32x32xf32>
    %177 = arith.divf %175, %176 : vector<32x32xf32>
    %178 = vector.extract_strided_slice %158 {offsets = [0, 64], sizes = [32, 32], strides = [1, 1]} : vector<32x96xf32> to vector<32x32xf32>
    %179 = arith.addf %178, %43 : vector<32x32xf32>
    %180 = vector.extract_strided_slice %159 {offsets = [0, 64], sizes = [32, 32], strides = [1, 1]} : vector<32x96xf32> to vector<32x32xf32>
    %181 = vector.broadcast %44 : vector<1x32xf32> to vector<32x32xf32>
    %182 = arith.addf %180, %181 : vector<32x32xf32>
    %183 = arith.mulf %168, %182 : vector<32x32xf32>
    %184 = arith.addf %179, %183 : vector<32x32xf32>
    %185 = math.tanh %184 : vector<32x32xf32>
    %cst_57 = arith.constant 1.000000e+00 : f32
    %186 = vector.broadcast %cst_57 : f32 to vector<32x32xf32>
    %187 = arith.subf %186, %177 : vector<32x32xf32>
    %188 = arith.mulf %187, %185 : vector<32x32xf32>
    %189 = arith.mulf %177, %154 : vector<32x32xf32>
    %190 = arith.addf %188, %189 : vector<32x32xf32>
    %c4_i32 = arith.constant 4 : i32
    %c32_i32_58 = arith.constant 32 : i32
    %191 = arith.muli %c4_i32, %c32_i32_58 : i32
    %192 = tpu.assume_multiple %191, 32 : i32
    %193 = arith.index_cast %192 : i32 to index
    %c0_59 = arith.constant 0 : index
    %194 = vector.load %arg16[%193, %c0_59] : memref<256x96xf32, #tpu.memory_space<vmem>>, vector<32x96xf32>
    %cst_60 = arith.constant dense<0.000000e+00> : vector<32x96xf32>
    %195 = tpu.matmul %190, %45, %cst_60 {dimension_numbers = #tpu.dot_dimension_numbers<[1], [0], [0], [1], [0, 0, 1, 1], [], []>} : vector<32x32xf32>, vector<32x96xf32>, vector<32x96xf32> -> vector<32x96xf32>
    %196 = vector.extract_strided_slice %194 {offsets = [0, 0], sizes = [32, 32], strides = [1, 1]} : vector<32x96xf32> to vector<32x32xf32>
    %197 = arith.addf %196, %38 : vector<32x32xf32>
    %198 = vector.extract_strided_slice %195 {offsets = [0, 0], sizes = [32, 32], strides = [1, 1]} : vector<32x96xf32> to vector<32x32xf32>
    %199 = arith.addf %197, %198 : vector<32x32xf32>
    %200 = arith.negf %199 : vector<32x32xf32>
    %201 = math.exp %200 : vector<32x32xf32>
    %cst_61 = arith.constant 1.000000e+00 : f32
    %202 = vector.broadcast %cst_61 : f32 to vector<32x32xf32>
    %203 = arith.addf %202, %201 : vector<32x32xf32>
    %204 = arith.divf %202, %203 : vector<32x32xf32>
    %205 = vector.extract_strided_slice %194 {offsets = [0, 32], sizes = [32, 32], strides = [1, 1]} : vector<32x96xf32> to vector<32x32xf32>
    %206 = arith.addf %205, %42 : vector<32x32xf32>
    %207 = vector.extract_strided_slice %195 {offsets = [0, 32], sizes = [32, 32], strides = [1, 1]} : vector<32x96xf32> to vector<32x32xf32>
    %208 = arith.addf %206, %207 : vector<32x32xf32>
    %209 = arith.negf %208 : vector<32x32xf32>
    %210 = math.exp %209 : vector<32x32xf32>
    %cst_62 = arith.constant 1.000000e+00 : f32
    %211 = vector.broadcast %cst_62 : f32 to vector<32x32xf32>
    %212 = arith.addf %211, %210 : vector<32x32xf32>
    %213 = arith.divf %211, %212 : vector<32x32xf32>
    %214 = vector.extract_strided_slice %194 {offsets = [0, 64], sizes = [32, 32], strides = [1, 1]} : vector<32x96xf32> to vector<32x32xf32>
    %215 = arith.addf %214, %43 : vector<32x32xf32>
    %216 = vector.extract_strided_slice %195 {offsets = [0, 64], sizes = [32, 32], strides = [1, 1]} : vector<32x96xf32> to vector<32x32xf32>
    %217 = vector.broadcast %44 : vector<1x32xf32> to vector<32x32xf32>
    %218 = arith.addf %216, %217 : vector<32x32xf32>
    %219 = arith.mulf %204, %218 : vector<32x32xf32>
    %220 = arith.addf %215, %219 : vector<32x32xf32>
    %221 = math.tanh %220 : vector<32x32xf32>
    %cst_63 = arith.constant 1.000000e+00 : f32
    %222 = vector.broadcast %cst_63 : f32 to vector<32x32xf32>
    %223 = arith.subf %222, %213 : vector<32x32xf32>
    %224 = arith.mulf %223, %221 : vector<32x32xf32>
    %225 = arith.mulf %213, %190 : vector<32x32xf32>
    %226 = arith.addf %224, %225 : vector<32x32xf32>
    %c5_i32 = arith.constant 5 : i32
    %c32_i32_64 = arith.constant 32 : i32
    %227 = arith.muli %c5_i32, %c32_i32_64 : i32
    %228 = tpu.assume_multiple %227, 32 : i32
    %229 = arith.index_cast %228 : i32 to index
    %c0_65 = arith.constant 0 : index
    %230 = vector.load %arg16[%229, %c0_65] : memref<256x96xf32, #tpu.memory_space<vmem>>, vector<32x96xf32>
    %cst_66 = arith.constant dense<0.000000e+00> : vector<32x96xf32>
    %231 = tpu.matmul %226, %45, %cst_66 {dimension_numbers = #tpu.dot_dimension_numbers<[1], [0], [0], [1], [0, 0, 1, 1], [], []>} : vector<32x32xf32>, vector<32x96xf32>, vector<32x96xf32> -> vector<32x96xf32>
    %232 = vector.extract_strided_slice %230 {offsets = [0, 0], sizes = [32, 32], strides = [1, 1]} : vector<32x96xf32> to vector<32x32xf32>
    %233 = arith.addf %232, %38 : vector<32x32xf32>
    %234 = vector.extract_strided_slice %231 {offsets = [0, 0], sizes = [32, 32], strides = [1, 1]} : vector<32x96xf32> to vector<32x32xf32>
    %235 = arith.addf %233, %234 : vector<32x32xf32>
    %236 = arith.negf %235 : vector<32x32xf32>
    %237 = math.exp %236 : vector<32x32xf32>
    %cst_67 = arith.constant 1.000000e+00 : f32
    %238 = vector.broadcast %cst_67 : f32 to vector<32x32xf32>
    %239 = arith.addf %238, %237 : vector<32x32xf32>
    %240 = arith.divf %238, %239 : vector<32x32xf32>
    %241 = vector.extract_strided_slice %230 {offsets = [0, 32], sizes = [32, 32], strides = [1, 1]} : vector<32x96xf32> to vector<32x32xf32>
    %242 = arith.addf %241, %42 : vector<32x32xf32>
    %243 = vector.extract_strided_slice %231 {offsets = [0, 32], sizes = [32, 32], strides = [1, 1]} : vector<32x96xf32> to vector<32x32xf32>
    %244 = arith.addf %242, %243 : vector<32x32xf32>
    %245 = arith.negf %244 : vector<32x32xf32>
    %246 = math.exp %245 : vector<32x32xf32>
    %cst_68 = arith.constant 1.000000e+00 : f32
    %247 = vector.broadcast %cst_68 : f32 to vector<32x32xf32>
    %248 = arith.addf %247, %246 : vector<32x32xf32>
    %249 = arith.divf %247, %248 : vector<32x32xf32>
    %250 = vector.extract_strided_slice %230 {offsets = [0, 64], sizes = [32, 32], strides = [1, 1]} : vector<32x96xf32> to vector<32x32xf32>
    %251 = arith.addf %250, %43 : vector<32x32xf32>
    %252 = vector.extract_strided_slice %231 {offsets = [0, 64], sizes = [32, 32], strides = [1, 1]} : vector<32x96xf32> to vector<32x32xf32>
    %253 = vector.broadcast %44 : vector<1x32xf32> to vector<32x32xf32>
    %254 = arith.addf %252, %253 : vector<32x32xf32>
    %255 = arith.mulf %240, %254 : vector<32x32xf32>
    %256 = arith.addf %251, %255 : vector<32x32xf32>
    %257 = math.tanh %256 : vector<32x32xf32>
    %cst_69 = arith.constant 1.000000e+00 : f32
    %258 = vector.broadcast %cst_69 : f32 to vector<32x32xf32>
    %259 = arith.subf %258, %249 : vector<32x32xf32>
    %260 = arith.mulf %259, %257 : vector<32x32xf32>
    %261 = arith.mulf %249, %226 : vector<32x32xf32>
    %262 = arith.addf %260, %261 : vector<32x32xf32>
    %c6_i32 = arith.constant 6 : i32
    %c32_i32_70 = arith.constant 32 : i32
    %263 = arith.muli %c6_i32, %c32_i32_70 : i32
    %264 = tpu.assume_multiple %263, 32 : i32
    %265 = arith.index_cast %264 : i32 to index
    %c0_71 = arith.constant 0 : index
    %266 = vector.load %arg16[%265, %c0_71] : memref<256x96xf32, #tpu.memory_space<vmem>>, vector<32x96xf32>
    %cst_72 = arith.constant dense<0.000000e+00> : vector<32x96xf32>
    %267 = tpu.matmul %262, %45, %cst_72 {dimension_numbers = #tpu.dot_dimension_numbers<[1], [0], [0], [1], [0, 0, 1, 1], [], []>} : vector<32x32xf32>, vector<32x96xf32>, vector<32x96xf32> -> vector<32x96xf32>
    %268 = vector.extract_strided_slice %266 {offsets = [0, 0], sizes = [32, 32], strides = [1, 1]} : vector<32x96xf32> to vector<32x32xf32>
    %269 = arith.addf %268, %38 : vector<32x32xf32>
    %270 = vector.extract_strided_slice %267 {offsets = [0, 0], sizes = [32, 32], strides = [1, 1]} : vector<32x96xf32> to vector<32x32xf32>
    %271 = arith.addf %269, %270 : vector<32x32xf32>
    %272 = arith.negf %271 : vector<32x32xf32>
    %273 = math.exp %272 : vector<32x32xf32>
    %cst_73 = arith.constant 1.000000e+00 : f32
    %274 = vector.broadcast %cst_73 : f32 to vector<32x32xf32>
    %275 = arith.addf %274, %273 : vector<32x32xf32>
    %276 = arith.divf %274, %275 : vector<32x32xf32>
    %277 = vector.extract_strided_slice %266 {offsets = [0, 32], sizes = [32, 32], strides = [1, 1]} : vector<32x96xf32> to vector<32x32xf32>
    %278 = arith.addf %277, %42 : vector<32x32xf32>
    %279 = vector.extract_strided_slice %267 {offsets = [0, 32], sizes = [32, 32], strides = [1, 1]} : vector<32x96xf32> to vector<32x32xf32>
    %280 = arith.addf %278, %279 : vector<32x32xf32>
    %281 = arith.negf %280 : vector<32x32xf32>
    %282 = math.exp %281 : vector<32x32xf32>
    %cst_74 = arith.constant 1.000000e+00 : f32
    %283 = vector.broadcast %cst_74 : f32 to vector<32x32xf32>
    %284 = arith.addf %283, %282 : vector<32x32xf32>
    %285 = arith.divf %283, %284 : vector<32x32xf32>
    %286 = vector.extract_strided_slice %266 {offsets = [0, 64], sizes = [32, 32], strides = [1, 1]} : vector<32x96xf32> to vector<32x32xf32>
    %287 = arith.addf %286, %43 : vector<32x32xf32>
    %288 = vector.extract_strided_slice %267 {offsets = [0, 64], sizes = [32, 32], strides = [1, 1]} : vector<32x96xf32> to vector<32x32xf32>
    %289 = vector.broadcast %44 : vector<1x32xf32> to vector<32x32xf32>
    %290 = arith.addf %288, %289 : vector<32x32xf32>
    %291 = arith.mulf %276, %290 : vector<32x32xf32>
    %292 = arith.addf %287, %291 : vector<32x32xf32>
    %293 = math.tanh %292 : vector<32x32xf32>
    %cst_75 = arith.constant 1.000000e+00 : f32
    %294 = vector.broadcast %cst_75 : f32 to vector<32x32xf32>
    %295 = arith.subf %294, %285 : vector<32x32xf32>
    %296 = arith.mulf %295, %293 : vector<32x32xf32>
    %297 = arith.mulf %285, %262 : vector<32x32xf32>
    %298 = arith.addf %296, %297 : vector<32x32xf32>
    %c7_i32 = arith.constant 7 : i32
    %c32_i32_76 = arith.constant 32 : i32
    %299 = arith.muli %c7_i32, %c32_i32_76 : i32
    %300 = tpu.assume_multiple %299, 32 : i32
    %301 = arith.index_cast %300 : i32 to index
    %c0_77 = arith.constant 0 : index
    %302 = vector.load %arg16[%301, %c0_77] : memref<256x96xf32, #tpu.memory_space<vmem>>, vector<32x96xf32>
    %cst_78 = arith.constant dense<0.000000e+00> : vector<32x96xf32>
    %303 = tpu.matmul %298, %45, %cst_78 {dimension_numbers = #tpu.dot_dimension_numbers<[1], [0], [0], [1], [0, 0, 1, 1], [], []>} : vector<32x32xf32>, vector<32x96xf32>, vector<32x96xf32> -> vector<32x96xf32>
    %304 = vector.extract_strided_slice %302 {offsets = [0, 0], sizes = [32, 32], strides = [1, 1]} : vector<32x96xf32> to vector<32x32xf32>
    %305 = arith.addf %304, %38 : vector<32x32xf32>
    %306 = vector.extract_strided_slice %303 {offsets = [0, 0], sizes = [32, 32], strides = [1, 1]} : vector<32x96xf32> to vector<32x32xf32>
    %307 = arith.addf %305, %306 : vector<32x32xf32>
    %308 = arith.negf %307 : vector<32x32xf32>
    %309 = math.exp %308 : vector<32x32xf32>
    %cst_79 = arith.constant 1.000000e+00 : f32
    %310 = vector.broadcast %cst_79 : f32 to vector<32x32xf32>
    %311 = arith.addf %310, %309 : vector<32x32xf32>
    %312 = arith.divf %310, %311 : vector<32x32xf32>
    %313 = vector.extract_strided_slice %302 {offsets = [0, 32], sizes = [32, 32], strides = [1, 1]} : vector<32x96xf32> to vector<32x32xf32>
    %314 = arith.addf %313, %42 : vector<32x32xf32>
    %315 = vector.extract_strided_slice %303 {offsets = [0, 32], sizes = [32, 32], strides = [1, 1]} : vector<32x96xf32> to vector<32x32xf32>
    %316 = arith.addf %314, %315 : vector<32x32xf32>
    %317 = arith.negf %316 : vector<32x32xf32>
    %318 = math.exp %317 : vector<32x32xf32>
    %cst_80 = arith.constant 1.000000e+00 : f32
    %319 = vector.broadcast %cst_80 : f32 to vector<32x32xf32>
    %320 = arith.addf %319, %318 : vector<32x32xf32>
    %321 = arith.divf %319, %320 : vector<32x32xf32>
    %322 = vector.extract_strided_slice %302 {offsets = [0, 64], sizes = [32, 32], strides = [1, 1]} : vector<32x96xf32> to vector<32x32xf32>
    %323 = arith.addf %322, %43 : vector<32x32xf32>
    %324 = vector.extract_strided_slice %303 {offsets = [0, 64], sizes = [32, 32], strides = [1, 1]} : vector<32x96xf32> to vector<32x32xf32>
    %325 = vector.broadcast %44 : vector<1x32xf32> to vector<32x32xf32>
    %326 = arith.addf %324, %325 : vector<32x32xf32>
    %327 = arith.mulf %312, %326 : vector<32x32xf32>
    %328 = arith.addf %323, %327 : vector<32x32xf32>
    %329 = math.tanh %328 : vector<32x32xf32>
    %cst_81 = arith.constant 1.000000e+00 : f32
    %330 = vector.broadcast %cst_81 : f32 to vector<32x32xf32>
    %331 = arith.subf %330, %321 : vector<32x32xf32>
    %332 = arith.mulf %331, %329 : vector<32x32xf32>
    %333 = arith.mulf %321, %298 : vector<32x32xf32>
    %334 = arith.addf %332, %333 : vector<32x32xf32>
    %c8_i32 = arith.constant 8 : i32
    %c0_82 = arith.constant 0 : index
    %c0_83 = arith.constant 0 : index
    %335 = vector.load %arg13[%c0_82, %c0_83] : memref<32x4xf32, #tpu.memory_space<vmem>>, vector<32x4xf32>
    %cst_84 = arith.constant dense<0.000000e+00> : vector<32x4xf32>
    %336 = tpu.matmul %334, %335, %cst_84 {dimension_numbers = #tpu.dot_dimension_numbers<[1], [0], [0], [1], [0, 0, 1, 1], [], []>} : vector<32x32xf32>, vector<32x4xf32>, vector<32x4xf32> -> vector<32x4xf32>
    %c0_85 = arith.constant 0 : index
    %c0_86 = arith.constant 0 : index
    %337 = vector.load %arg14[%c0_85, %c0_86] : memref<1x4xf32, #tpu.memory_space<vmem>>, vector<1x4xf32>
    %338 = vector.broadcast %337 : vector<1x4xf32> to vector<32x4xf32>
    %339 = arith.addf %336, %338 : vector<32x4xf32>
    %c0_87 = arith.constant 0 : index
    %c0_88 = arith.constant 0 : index
    %340 = vector.load %arg15[%c0_87, %c0_88] : memref<32x4xf32, #tpu.memory_space<vmem>>, vector<32x4xf32>
    tpu.vector_store %arg15[%c0_87, %c0_88], %339 {strides = array<i32>} : memref<32x4xf32, #tpu.memory_space<vmem>>, vector<32x4xf32>,
    return
  }
}

</mosaic_0001>

<bundles_post_ra>
// kernel: tpu_custom_call.1
= control target key start
LH: loop header
LB: loop body
LE: loop exit
PB: predicated region body
PF: predicated region fallthrough
CT: control target
= control target key end

     0   :  { %vm67_vm0 = vcmask 1045504   ;;  %vm60_vm1 = vcmask 48128   ;;  %v3591_v9 = vmov 0.0|0.0   ;;  %vm3592_vm2 = vmmov 0   ;;  %s3595_s30 = smov 96   ;;  %s4555_s2 = inlined_call_operand.vmem [shape: f32[6,32], index: 2, kind: input, shape index: {}]   ;;  %s4556_s1 = inlined_call_operand.vmem [shape: f32[16,6], index: 1, kind: input, shape index: {}]   ;;  %s4557_s9 = inlined_call_operand.vmem [shape: f32[64,96], index: 9, kind: input, shape index: {}]   ;;  %s4558_s4 = inlined_call_operand.vmem [shape: f32[32,32], index: 4, kind: input, shape index: {}]   ;;  %s4559_s6 = inlined_call_operand.vmem [shape: f32[32,32], index: 6, kind: input, shape index: {}]   ;;  %s4560_s7 = inlined_call_operand.vmem [shape: f32[8,32], index: 7, kind: input, shape index: {}]   ;;  %s4561_s3 = inlined_call_operand.vmem [shape: f32[1,32], index: 3, kind: input, shape index: {}]   ;;  %s4562_s8 = inlined_call_operand.vmem [shape: f32[1,32], index: 8, kind: input, shape index: {}]   ;;  %s4563_s0 = inlined_call_operand.vmem [shape: f32[256,8], index: 0, kind: input, shape index: {}]   ;;  %s4564_s10 = inlined_call_operand.vmem [shape: f32[32,96], index: 10, kind: input, shape index: {}]   ;;  %s4565_s5 = inlined_call_operand.vmem [shape: f32[1,32], index: 5, kind: input, shape index: {}]   ;;  %s4566_s11 = inlined_call_operand.vmem [shape: f32[1,96], index: 11, kind: input, shape index: {}]   ;;  %s4567_s12 = inlined_call_operand.vmem [shape: f32[1,96], index: 12, kind: input, shape index: {}]   ;;  %s4568_s13 = inlined_call_operand.vmem [shape: f32[32,4], index: 13, kind: input, shape index: {}]   ;;  %s4569_s14 = inlined_call_operand.vmem [shape: f32[1,4], index: 14, kind: input, shape index: {}]   ;;  %s4570_s15 = inlined_call_operand.vmem [shape: f32[32,4], index: 15, kind: output, shape index: {}]  }
   0x1   :  { %v52_v0 = vld [vmem:[%s4555_s2] sm:$0x3f]  ;;  %v51_v2 = vld [vmem:[%s4556_s1 + $0x8] sm:$0xff]  ;;  %v253_v5 = vld [vmem:[%s4557_s9 + $0x10] sm:$0xff]  ;;  %v3593_v14 = vmov 0.0   ;;  %vm167_vm3 = vcmask 261120  }
   0x2   :  { %v50_v1 = vld [vmem:[%s4556_s1] sm:$0xff]  ;;  %3056 = vmatprep.subr.msk.mxu0 %vm67_vm0, %v52_v0  ;;  %v252_v4 = vld [vmem:[%s4557_s9 + $0x8] sm:$0xff]  ;;  %v254_v7 = vld [vmem:[%s4557_s9 + $0x18] sm:$0xff]  ;;  %vm533_vm4 = vcmask 64512   ;;  %vm855_vm5 = vcmask 785408   ;;  %vm2807_vm6 = vcmask 31744  }
   0x3   :  { %3058 = vmatprep.mubr.msk.f32.mxu0 %vm60_vm1, %v50_v1  ;;  %v251_v3 = vld [vmem:[%s4557_s9] sm:$0xff]  ;;  %3057 = vmatpush3.msk.msra.mxu0 %vm67_vm0, %v52_v0  ;;  %v149_v10 = vld [vmem:[%s4558_s4 + $0x8] sm:$0xff]  ;;  %v3293_v13 = vpack.c.bf16 %v254_v7, %v253_v5  ;;  %v150_v19 = vld [vmem:[%s4558_s4 + $0x10] sm:$0xff] }
   0x4   :  { %v3290_v6 = vpack.c.bf16 %v252_v4, %v251_v3  ;;  %v148_v8 = vld [vmem:[%s4558_s4] sm:$0xff]  ;;  %3059 = vmatmul.mubr.msk.f32.vlgmr.msra.gmra.mrb[0].mxu0 %vm60_vm1, %v51_v2  ;;  %3289 = vmatprep.subr.bf16.mxu0 %v3591_v9  ;;  %v153_v12 = vld [vmem:[%s4559_s6 + $0x8] sm:$0xff]  ;;  %v151_v20 = vld [vmem:[%s4558_s4 + $0x18] sm:$0xff] }
   0x5   :  { %v152_v11 = vld [vmem:[%s4559_s6] sm:$0xff]  ;;  %3080 = vmatprep.mubr.msk.f32.mxu0 %vm3592_vm2, %v3593_v14  ;;  %v157_v16 = vadd.f32 %v153_v12, %v149_v10  ;;  %v154_v21 = vld [vmem:[%s4559_s6 + $0x10] sm:$0xff]  ;;  %v155_v22 = vld [vmem:[%s4559_s6 + $0x18] sm:$0xff] }
   0x6   :  { %3291 = vmatpush3.bf16.msra.mxu0 %v3290_v6  ;;  %v156_v15 = vadd.f32 %v152_v11, %v148_v8  ;;  %v259_v18 = vld [vmem:[%s4560_s7] sm:$0xff]  ;;  %v158_v23 = vadd.f32 %v154_v21, %v150_v19  ;;  %v159_v24 = vadd.f32 %v155_v22, %v151_v20  ;;  %v256_v27 = vld [vmem:[%s4557_s9 + $0x28] sm:$0xff]  ;;  %v503_v41 = vld [vmem:[%s4563_s0 + $0x10] sm:$0xff] }
   0x7   :  { %3292 = vmatprep.subr.bf16.mxu0 %v3591_v9  ;;  %v255_v26 = vld [vmem:[%s4557_s9 + $0x20] sm:$0xff]  ;;  %v502_v40 = vld [vmem:[%s4563_s0 + $0x8] sm:$0xff]  ;;  %v504_v42 = vld [vmem:[%s4563_s0 + $0x18] sm:$0xff] }
   0x8   :  { %v3281_v17 = vpack.c.bf16 %v157_v16, %v156_v15  ;;  %v3285_v25 = vpack.c.bf16 %v159_v24, %v158_v23  ;;  %v3301_v28 = vpack.c.bf16 %v256_v27, %v255_v26  ;;  %v2816_v29 = vld [vmem:[%s4561_s3] ss:$0 sm:$0xff]  ;;  %v506_v44 = vld [vmem:[%s4563_s0 + $0x28] sm:$0xff]  ;;  %v507_v45 = vld [vmem:[%s4563_s0 + $0x30] sm:$0xff] }
   0x9   :  { %v333_v38 = vld [vmem:[%s4562_s8] sm:$0x1]  ;;  %v508_v46 = vld [vmem:[%s4563_s0 + $0x38] sm:$0xff]  ;;  %v510_v48 = vld [vmem:[%s4563_s0 + $0x48] sm:$0xff] }
   0xa   :  { %3294 = vmatpush3.bf16.msra.mxu0 %v3293_v13  ;;  %3282 = vmatprep.subr.bf16.mxu1 %v3281_v17  ;;  %v501_v39 = vld [vmem:[%s4563_s0] sm:$0xff]  ;;  %v511_v49 = vld [vmem:[%s4563_s0 + $0x50] sm:$0xff]  ;;  %v512_v50 = vld [vmem:[%s4563_s0 + $0x58] sm:$0xff] }
   0xb   :  { %3284 = vmatpush3.bf16.msra.mxu1 %v3281_v17  ;;  %3302 = vmatprep.subr.bf16.mxu0 %v3301_v28  ;;  %v505_v43 = vld [vmem:[%s4563_s0 + $0x20] sm:$0xff]  ;;  %v514_v52 = vld [vmem:[%s4563_s0 + $0x68] sm:$0xff]  ;;  %v515_v53 = vld [vmem:[%s4563_s0 + $0x70] sm:$0xff] }
   0xc   :  { %3286 = vmatprep.subr.bf16.mxu1 %v3285_v25  ;;  %v509_v47 = vld [vmem:[%s4563_s0 + $0x40] sm:$0xff]  ;;  %v516_v54 = vld [vmem:[%s4563_s0 + $0x78] sm:$0xff]  ;;  %v518_v56 = vld [vmem:[%s4563_s0 + $0x88] sm:$0xff] }
   0xd   :  { %3081 = vmatmul.mubr.msk.f32.vlgmr.msra.gmra.mrb[2].mxu0 %vm167_vm3, %v259_v18  ;;  %v513_v51 = vld [vmem:[%s4563_s0 + $0x60] sm:$0xff]  ;;  %v519_v57 = vld [vmem:[%s4563_s0 + $0x90] sm:$0xff]  ;;  %v520_v58 = vld [vmem:[%s4563_s0 + $0x98] sm:$0xff] }
   0xe   :  { %3304 = vmatpush3.bf16.msra.mxu0 %v3301_v28  ;;  %v517_v55 = vld [vmem:[%s4563_s0 + $0x80] sm:$0xff]  ;;  %v522_v60 = vld [vmem:[%s4563_s0 + $0xa8] sm:$0xff]  ;;  %v523_v61 = vld [vmem:[%s4563_s0 + $0xb0] sm:$0xff] }
   0xf   :  { %3288 = vmatpush3.bf16.msra.mxu1 %v3285_v25  ;;  %v521_v59 = vld [vmem:[%s4563_s0 + $0xa0] sm:$0xff]  ;;  %v524_v62 = vld [vmem:[%s4563_s0 + $0xb8] sm:$0xff]  ;;  %v526_v0 = vld [vmem:[%s4563_s0 + $0xc8] sm:$0xff] }
  0x10   :  { %3295 = vmatprep.subr.bf16.mxu1 %v3591_v9  ;;  %v525_v63 = vld [vmem:[%s4563_s0 + $0xc0] sm:$0xff]  ;;  %v527_v1 = vld [vmem:[%s4563_s0 + $0xd0] sm:$0xff]  ;;  %v528_v2 = vld [vmem:[%s4563_s0 + $0xd8] sm:$0xff] }
  0x11   :  { %v529_v3 = vld [vmem:[%s4563_s0 + $0xe0] sm:$0xff]  ;;  %v530_v4 = vld [vmem:[%s4563_s0 + $0xe8] sm:$0xff]  ;;  %v257_v5 = vld [vmem:[%s4557_s9 + $0x30] sm:$0xff] }
  0x12   :  { %v531_v8 = vld [vmem:[%s4563_s0 + $0xf0] sm:$0xff]  ;;  %v897_v10 = vld [vmem:[%s4564_s10] sm:$0xff]  ;;  %v898_v11 = vld [vmem:[%s4564_s10 + $0x8] sm:$0xff] }
  0x13   :  { %v3886_v12 = vpack.c.bf16 %v898_v11, %v897_v10  ;;  %v899_v19 = vld [vmem:[%s4564_s10 + $0x10] sm:$0xff]  ;;  %v900_v20 = vld [vmem:[%s4564_s10 + $0x18] sm:$0xff] }
  0x14   :  { %v3898_v23 = vpack.c.bf16 %v900_v20, %v899_v19 }
  0xd7   :  { %v3060_v30 = vpop.f32.mrb[0].mxu0 }
  0xd8   :  { %v143_v31 = vadd.f32 %v3060_v30, %v2816_v29  ;;  %v137_v32 = vpop.f32.mrb[1].mxu0 }
  0xd9   :  { %v138_v33 = vadd.f32 %v2816_v29, %v137_v32 }
  0xda   :  { %v147_v35 = vmax.f32 %v143_v31, 0.0 }
  0xdb   :  { %v146_v34 = vmax.f32 %v138_v33, 0.0 }
  0xdd   :  { %3069 = vmatprep.mubr.msk.f32.mxu1 %vm167_vm3, %v146_v34 }
  0xde   :  { %3070 = vmatmul.mubr.msk.f32.vlgmr.msra.gmra.mrb[0].mxu1 %vm167_vm3, %v147_v35 }
  0xdf   :  { %3297 = vmatpush3.bf16.msra.mxu1 %v3290_v6  ;;  %3091 = vmatprep.mubr.msk.f32.mxu1 %vm3592_vm2, %v3593_v14  ;;  %v258_v6 = vld [vmem:[%s4557_s9 + $0x38] sm:$0xff] }
  0xe0   :  { %v329_v36 = vpop.f32.mrb[2].mxu0  ;;  %3298 = vmatprep.subr.bf16.mxu1 %v3591_v9  ;;  %v3305_v7 = vpack.c.bf16 %v258_v6, %v257_v5  ;;  %v532_v9 = vld [vmem:[%s4563_s0 + $0xf8] sm:$0xff] }
  0xe1   :  { %v3082_v37 = vpop.f32.mrb[3].mxu0 }
  0xe2   :  { %3306 = vmatprep.subr.bf16.mxu0 %v3305_v7 }
  0xe3   :  { %3300 = vmatpush3.bf16.msra.mxu1 %v3293_v13  ;;  %3308 = vmatpush3.bf16.msra.mxu0 %v3305_v7  ;;  %v2820_v13 = vld [vmem:[%s4565_s5] ss:$0 sm:$0xff] }
  0xe4   :  { %3105 = vmatprep.subr.mxu1 %v329_v36  ;;  %3310 = vmatprep.subr.bf16.mxu0 %v3886_v12 }
  0xe6   :  { %3092 = vmatmul.mubr.msk.f32.vlgmr.msra.gmra.mrb[2].mxu1 %vm167_vm3, %v333_v38 }
  0xe7   :  { %3106 = vmatpush3.msra.mxu1 %v329_v36  ;;  %3107 = vmatprep.mubr.msk.f32.mxu1 %vm533_vm4, %v501_v39 }
  0xea   :  { %3108 = vmatmul.mubr.msk.f32.vlgmr.msra.gmra.mrb[4].mxu1 %vm533_vm4, %v502_v40 }
  0xeb   :  { %3110 = vmatprep.mubr.msk.f32.mxu1 %vm533_vm4, %v503_v41 }
  0xee   :  { %3111 = vmatmul.mubr.msk.f32.gmra.mrb[6].mxu1 %vm533_vm4, %v504_v42 }
  0xef   :  { %3113 = vmatprep.mubr.msk.f32.mxu1 %vm533_vm4, %v505_v43 }
  0xf2   :  { %3114 = vmatmul.mubr.msk.f32.gmra.mrb[8].mxu1 %vm533_vm4, %v506_v44 }
  0xf3   :  { %3116 = vmatprep.mubr.msk.f32.mxu1 %vm533_vm4, %v507_v45 }
  0xf6   :  { %3117 = vmatmul.mubr.msk.f32.gmra.mrb[10].mxu1 %vm533_vm4, %v508_v46 }
  0xf7   :  { %3119 = vmatprep.mubr.msk.f32.mxu1 %vm533_vm4, %v509_v47 }
  0xfa   :  { %3120 = vmatmul.mubr.msk.f32.gmra.mrb[12].mxu1 %vm533_vm4, %v510_v48 }
  0xfb   :  { %3122 = vmatprep.mubr.msk.f32.mxu1 %vm533_vm4, %v511_v49 }
  0xfe   :  { %3123 = vmatmul.mubr.msk.f32.gmra.mrb[14].mxu1 %vm533_vm4, %v512_v50 }
  0xff   :  { %3125 = vmatprep.mubr.msk.f32.mxu1 %vm533_vm4, %v513_v51 }
 0x102   :  { %3126 = vmatmul.mubr.msk.f32.gmra.mrb[16].mxu1 %vm533_vm4, %v514_v52 }
 0x103   :  { %3128 = vmatprep.mubr.msk.f32.mxu1 %vm533_vm4, %v515_v53 }
 0x106   :  { %3129 = vmatmul.mubr.msk.f32.gmra.mrb[18].mxu1 %vm533_vm4, %v516_v54 }
 0x107   :  { %3131 = vmatprep.mubr.msk.f32.mxu1 %vm533_vm4, %v517_v55 }
 0x10a   :  { %3132 = vmatmul.mubr.msk.f32.gmra.mrb[20].mxu1 %vm533_vm4, %v518_v56 }
 0x10b   :  { %3134 = vmatprep.mubr.msk.f32.mxu1 %vm533_vm4, %v519_v57  ;;  %v407_v57 = vlaneseq }
 0x10e   :  { %3135 = vmatmul.mubr.msk.f32.gmra.mrb[22].mxu1 %vm533_vm4, %v520_v58  ;;  %v408_v58 = vshrl.u32 %v407_v57, 7 }
 0x10f   :  { %3137 = vmatprep.mubr.msk.f32.mxu1 %vm533_vm4, %v521_v59 }
 0x110   :  { %v409_v59 = vsub.s32 0, %v408_v58 }
 0x112   :  { %3138 = vmatmul.mubr.msk.f32.gmra.mrb[24].mxu1 %vm533_vm4, %v522_v60 }
 0x113   :  { %3140 = vmatprep.mubr.msk.f32.mxu1 %vm533_vm4, %v523_v61 }
 0x116   :  { %3141 = vmatmul.mubr.msk.f32.gmra.mrb[26].mxu1 %vm533_vm4, %v524_v62  ;;  %v2827_v62 = vld [vmem:[%s4566_s11] ss:$0 sm:$0xff]  ;;  %s3594_s11 = smov 64  }
 0x117   :  { %3143 = vmatprep.mubr.msk.f32.mxu1 %vm533_vm4, %v525_v63 }
 0x11a   :  { %3144 = vmatmul.mubr.msk.f32.gmra.mrb[28].mxu1 %vm533_vm4, %v526_v0 }
 0x11b   :  { %3146 = vmatprep.mubr.msk.f32.mxu1 %vm533_vm4, %v527_v1  ;;  %v3955_v1 = vld [vmem:[%s4567_s12] ss:$0 sm:$0xff] }
 0x11e   :  { %3147 = vmatmul.mubr.msk.f32.gmra.mrb[30].mxu1 %vm533_vm4, %v528_v2 }
 0x11f   :  { %3149 = vmatprep.mubr.msk.f32.mxu1 %vm533_vm4, %v529_v3 }
 0x122   :  { %3150 = vmatmul.mubr.msk.f32.gmra.mrb[32].mxu1 %vm533_vm4, %v530_v4 }
 0x123   :  { %3152 = vmatprep.mubr.msk.f32.mxu1 %vm533_vm4, %v531_v8 }
 0x126   :  { %3153 = vmatmul.mubr.msk.f32.gmra.mrb[34].mxu1 %vm533_vm4, %v532_v9 }
 0x1b1   :  { %v3071_v15 = vpop.f32.mrb[0].mxu1 }
 0x1b2   :  { %v246_v16 = vadd.f32 %v3071_v15, %v2820_v13  ;;  %v240_v17 = vpop.f32.mrb[1].mxu1 }
 0x1b3   :  { %v241_v18 = vadd.f32 %v2820_v13, %v240_v17 }
 0x1b4   :  { %v250_v22 = vmax.f32 %v246_v16, 0.0 }
 0x1b5   :  { %v249_v21 = vmax.f32 %v241_v18, 0.0 }
 0x1b7   :  { %3102 = vmatprep.mubr.msk.f32.mxu0 %vm167_vm3, %v249_v21 }
 0x1b8   :  { %3103 = vmatmul.mubr.msk.f32.vlgmr.msra.gmra.mrb[4].mxu0 %vm167_vm3, %v250_v22 }
 0x1b9   :  { %3312 = vmatpush3.bf16.msra.mxu0 %v3886_v12  ;;  %3163 = vmatprep.mubr.f32.mxu0 %v3593_v14  ;;  %v3904_v24 = vpop.f32.mrb[2].mxu1 }
 0x1ba   :  { %3314 = vmatprep.subr.bf16.mxu0 %v3898_v23  ;;  %v3093_v25 = vpop.f32.mrb[3].mxu1  ;;  %v410_v60 = vrot.slane %v3904_v24, %v409_v59 }
 0x1bd   :  { %3316 = vmatpush3.bf16.msra.mxu0 %v3898_v23  ;;  %v3109_v26 = vpop.f32.mrb[4].mxu1 }
 0x1be   :  { %857 = vst.msk [vmem:[#allocation2 + $0x8] sm:$0xff] %vm855_vm5, %v3109_v26  ;;  %v696_v27 = vpop.f32.mrb[5].mxu1  ;;  %3318 = vmatprep.subr.bf16.mxu0 %v3886_v12 }
 0x1bf   :  { %856 = vst.msk [vmem:[#allocation2] sm:$0xff] %vm855_vm5, %v696_v27 }
 0x1c0   :  { %3164 = vmatmul.mubr.f32.vlgmr.msra.gmra.mrb[6].mxu0 %v3593_v14 }
 0x1c1   :  { %3166 = vmatprep.mubr.f32.mxu0 %v3593_v14  ;;  %v3112_v28 = vpop.f32.mrb[6].mxu1  ;;  %3320 = vmatpush3.bf16.msra.mxu0 %v3886_v12 }
 0x1c2   :  { %859 = vst.msk [vmem:[#allocation2 + $0x18] sm:$0xff] %vm855_vm5, %v3112_v28  ;;  %v706_v29 = vpop.f32.mrb[7].mxu1  ;;  %3322 = vmatprep.subr.bf16.mxu0 %v3898_v23 }
 0x1c3   :  { %858 = vst.msk [vmem:[#allocation2 + $0x10] sm:$0xff] %vm855_vm5, %v706_v29 }
 0x1c4   :  { %3167 = vmatmul.mubr.f32.gmra.mrb[8].mxu0 %v3593_v14 }
 0x1c5   :  { %v3115_v30 = vpop.f32.mrb[8].mxu1  ;;  %3324 = vmatpush3.bf16.msra.mxu0 %v3898_v23  ;;  %v902_v3 = vld [vmem:[#allocation2 + $0x8] sm:$0xff] }
 0x1c6   :  { %861 = vst.msk [vmem:[#allocation2 + $0x28] sm:$0xff] %vm855_vm5, %v3115_v30  ;;  %v716_v31 = vpop.f32.mrb[9].mxu1  ;;  %3326 = vmatprep.subr.bf16.mxu0 %v3886_v12  ;;  %v901_v7 = vld [vmem:[#allocation2] sm:$0xff] }
 0x1c7   :  { %860 = vst.msk [vmem:[#allocation2 + $0x20] sm:$0xff] %vm855_vm5, %v716_v31 }
 0x1c9   :  { %v3118_v32 = vpop.f32.mrb[10].mxu1  ;;  %v904_v4 = vld [vmem:[#allocation2 + $0x18] sm:$0xff] }
 0x1ca   :  { %863 = vst.msk [vmem:[#allocation2 + $0x38] sm:$0xff] %vm855_vm5, %v3118_v32  ;;  %v726_v33 = vpop.f32.mrb[11].mxu1  ;;  %v903_v8 = vld [vmem:[#allocation2 + $0x10] sm:$0xff] }
 0x1cb   :  { %862 = vst.msk [vmem:[#allocation2 + $0x30] sm:$0xff] %vm855_vm5, %v726_v33 }
 0x1cd   :  { %v3121_v34 = vpop.f32.mrb[12].mxu1  ;;  %v3957_v5 = vld [vmem:[#allocation2 + $0x28] sm:$0xff] }
 0x1ce   :  { %865 = vst.msk [vmem:[#allocation2 + $0x48] sm:$0xff] %vm855_vm5, %v3121_v34  ;;  %v736_v14 = vpop.f32.mrb[13].mxu1  ;;  %v3961_v9 = vld [vmem:[#allocation2 + $0x20] sm:$0xff] }
 0x1cf   :  { %864 = vst.msk [vmem:[#allocation2 + $0x40] sm:$0xff] %vm855_vm5, %v736_v14 }
 0x1d1   :  { %v3124_v35 = vpop.f32.mrb[14].mxu1  ;;  %v3989_v20 = vld [vmem:[#allocation2 + $0x38] sm:$0xff] }
 0x1d2   :  { %867 = vst.msk [vmem:[#allocation2 + $0x58] sm:$0xff] %vm855_vm5, %v3124_v35  ;;  %v746_v36 = vpop.f32.mrb[15].mxu1  ;;  %v3991_v21 = vld [vmem:[#allocation2 + $0x30] sm:$0xff] }
 0x1d3   :  { %866 = vst.msk [vmem:[#allocation2 + $0x50] sm:$0xff] %vm855_vm5, %v746_v36 }
 0x1d5   :  { %v3127_v37 = vpop.f32.mrb[16].mxu1  ;;  %v3999_v27 = vld [vmem:[#allocation2 + $0x48] sm:$0xff] }
 0x1d6   :  { %869 = vst.msk [vmem:[#allocation2 + $0x68] sm:$0xff] %vm855_vm5, %v3127_v37  ;;  %v756_v38 = vpop.f32.mrb[17].mxu1  ;;  %v4011_v32 = vld [vmem:[#allocation2 + $0x40] sm:$0xff] }
 0x1d7   :  { %868 = vst.msk [vmem:[#allocation2 + $0x60] sm:$0xff] %vm855_vm5, %v756_v38 }
 0x1d9   :  { %v3130_v39 = vpop.f32.mrb[18].mxu1  ;;  %v4013_v33 = vld [vmem:[#allocation2 + $0x58] sm:$0xff] }
 0x1da   :  { %871 = vst.msk [vmem:[#allocation2 + $0x78] sm:$0xff] %vm855_vm5, %v3130_v39  ;;  %v766_v40 = vpop.f32.mrb[19].mxu1  ;;  %v4015_v34 = vld [vmem:[#allocation2 + $0x50] sm:$0xff] }
 0x1db   :  { %870 = vst.msk [vmem:[#allocation2 + $0x70] sm:$0xff] %vm855_vm5, %v766_v40 }
 0x1dd   :  { %v3133_v41 = vpop.f32.mrb[20].mxu1 }
 0x1de   :  { %873 = vst.msk [vmem:[#allocation2 + $0x88] sm:$0xff] %vm855_vm5, %v3133_v41  ;;  %v776_v42 = vpop.f32.mrb[21].mxu1 }
 0x1df   :  { %872 = vst.msk [vmem:[#allocation2 + $0x80] sm:$0xff] %vm855_vm5, %v776_v42 }
 0x1e1   :  { %v3136_v43 = vpop.f32.mrb[22].mxu1 }
 0x1e2   :  { %875 = vst.msk [vmem:[#allocation2 + $0x98] sm:$0xff] %vm855_vm5, %v3136_v43  ;;  %v786_v44 = vpop.f32.mrb[23].mxu1  ;;  %v4037_v43 = vld [vmem:[#allocation2 + $0x68] sm:$0xff] }
 0x1e3   :  { %874 = vst.msk [vmem:[#allocation2 + $0x90] sm:$0xff] %vm855_vm5, %v786_v44 }
 0x1e5   :  { %v3139_v45 = vpop.f32.mrb[24].mxu1 }
 0x1e6   :  { %877 = vst.msk [vmem:[#allocation2 + $0xa8] sm:$0xff] %vm855_vm5, %v3139_v45  ;;  %v796_v46 = vpop.f32.mrb[25].mxu1 }
 0x1e7   :  { %876 = vst.msk [vmem:[#allocation2 + $0xa0] sm:$0xff] %vm855_vm5, %v796_v46  ;;  %v4039_v46 = vld [vmem:[#allocation2 + $0x60] sm:$0xff] }
 0x1e9   :  { %v3142_v47 = vpop.f32.mrb[26].mxu1  ;;  %v4069_v58 = vld [vmem:[#allocation2 + $0x98] sm:$0xff] }
 0x1ea   :  { %879 = vst.msk [vmem:[#allocation2 + $0xb8] sm:$0xff] %vm855_vm5, %v3142_v47  ;;  %v806_v48 = vpop.f32.mrb[27].mxu1  ;;  %v4041_v47 = vld [vmem:[#allocation2 + $0x78] sm:$0xff]  ;;  %v4071_v59 = vld [vmem:[#allocation2 + $0x90] sm:$0xff] }
 0x1eb   :  { %878 = vst.msk [vmem:[#allocation2 + $0xb0] sm:$0xff] %vm855_vm5, %v806_v48  ;;  %v4043_v48 = vld [vmem:[#allocation2 + $0x70] sm:$0xff] }
 0x1ed   :  { %v3145_v49 = vpop.f32.mrb[28].mxu1 }
 0x1ee   :  { %881 = vst.msk [vmem:[#allocation2 + $0xc8] sm:$0xff] %vm855_vm5, %v3145_v49  ;;  %v816_v50 = vpop.f32.mrb[29].mxu1 }
 0x1ef   :  { %880 = vst.msk [vmem:[#allocation2 + $0xc0] sm:$0xff] %vm855_vm5, %v816_v50 }
 0x1f1   :  { %v3148_v51 = vpop.f32.mrb[30].mxu1 }
 0x1f2   :  { %883 = vst.msk [vmem:[#allocation2 + $0xd8] sm:$0xff] %vm855_vm5, %v3148_v51  ;;  %v826_v52 = vpop.f32.mrb[31].mxu1 }
 0x1f3   :  { %882 = vst.msk [vmem:[#allocation2 + $0xd0] sm:$0xff] %vm855_vm5, %v826_v52 }
 0x1f5   :  { %v3151_v53 = vpop.f32.mrb[32].mxu1 }
 0x1f6   :  { %885 = vst.msk [vmem:[#allocation2 + $0xe8] sm:$0xff] %vm855_vm5, %v3151_v53  ;;  %v836_v54 = vpop.f32.mrb[33].mxu1  ;;  %v4051_v53 = vld [vmem:[#allocation2 + $0x88] sm:$0xff] }
 0x1f7   :  { %884 = vst.msk [vmem:[#allocation2 + $0xe0] sm:$0xff] %vm855_vm5, %v836_v54  ;;  %v4053_v54 = vld [vmem:[#allocation2 + $0x80] sm:$0xff] }
 0x1f9   :  { %v3154_v55 = vpop.f32.mrb[34].mxu1 }
 0x1fa   :  { %887 = vst.msk [vmem:[#allocation2 + $0xf8] sm:$0xff] %vm855_vm5, %v3154_v55  ;;  %v846_v56 = vpop.f32.mrb[35].mxu1 }
 0x1fb   :  { %886 = vst.msk [vmem:[#allocation2 + $0xf0] sm:$0xff] %vm855_vm5, %v846_v56 }
 0x28b   :  { %v3104_v61 = vpop.f32.mrb[4].mxu0 }
 0x28c   :  { %v489_v63 = vadd.f32 %v3104_v61, %v410_v60  ;;  %v483_v0 = vpop.f32.mrb[5].mxu0  ;;  %v2014_v61 = vld [vmem:[#allocation2 + $0xa0] sm:$0xff] }
 0x28d   :  { %v484_v2 = vadd.f32 %v483_v0, %v410_v60  ;;  %v2015_v60 = vld [vmem:[#allocation2 + $0xa8] sm:$0xff] }
 0x28e   :  { %v3959_v6 = vadd.f32 %v2827_v62, %v489_v63 }
 0x28f   :  { %v3963_v10 = vadd.f32 %v2827_v62, %v484_v2  ;;  %v2017_v2 = vld [vmem:[#allocation2 + $0xb8] sm:$0xff] }
 0x290   :  { %v3967_v11 = vadd.f32 %v3955_v1, %v3959_v6  ;;  %v3970_v13 = vadd.f32 %v902_v3, %v3959_v6  ;;  %v3973_v15 = vadd.f32 %v904_v4, %v3959_v6  ;;  %v3977_v16 = vadd.f32 %v3957_v5, %v3959_v6 }
 0x291   :  { %v3981_v17 = vadd.f32 %v3955_v1, %v3963_v10  ;;  %v3984_v18 = vadd.f32 %v901_v7, %v3963_v10  ;;  %v3987_v19 = vadd.f32 %v903_v8, %v3963_v10  ;;  %v3995_v22 = vadd.f32 %v3961_v9, %v3963_v10 }
 0x292   :  { %v994_v24 = vadd.f32 %v902_v3, %v3967_v11  ;;  %v4005_v30 = vadd.f32 %v3989_v20, %v3959_v6  ;;  %v4009_v31 = vadd.f32 %v3991_v21, %v3963_v10  ;;  %v996_v36 = vadd.f32 %v904_v4, %v3967_v11  ;;  %v2016_v3 = vld [vmem:[#allocation2 + $0xb0] sm:$0xff] }
 0x293   :  { %v3165_v25 = vpop.f32.mrb[6].mxu0  ;;  %v993_v26 = vadd.f32 %v901_v7, %v3981_v17  ;;  %v4021_v37 = vadd.f32 %v3999_v27, %v3959_v6  ;;  %v995_v39 = vadd.f32 %v903_v8, %v3981_v17  ;;  %v4027_v40 = vadd.f32 %v4011_v32, %v3963_v10  ;;  %v2241_v8 = vld [vmem:[#allocation2 + $0xc8] sm:$0xff] }
 0x294   :  { %v4001_v28 = vadd.f32 %v3165_v25, %v994_v24  ;;  %v974_v29 = vpop.f32.mrb[7].mxu0  ;;  %v4031_v41 = vadd.f32 %v4013_v33, %v3959_v6  ;;  %v4035_v42 = vadd.f32 %v4015_v34, %v3963_v10  ;;  %v1030_v49 = vadd.f32 %v3165_v25, %v3955_v1  ;;  %v2240_v24 = vld [vmem:[#allocation2 + $0xc0] sm:$0xff] }
 0x295   :  { %v997_v14 = vadd.f32 %v993_v26, %v974_v29  ;;  %v1029_v35 = vadd.f32 %v3955_v1, %v974_v29  ;;  %v4049_v52 = vadd.f32 %v4037_v43, %v3959_v6  ;;  %v4059_v55 = vadd.f32 %v4039_v46, %v3963_v10  ;;  %v2243_v29 = vld [vmem:[#allocation2 + $0xd8] sm:$0xff] }
 0x296   :  { %v4063_v56 = vadd.f32 %v4041_v47, %v3959_v6  ;;  %v4067_v57 = vadd.f32 %v4043_v48, %v3963_v10  ;;  %v4076_v63 = vadd.f32 %v4051_v53, %v3959_v6  ;;  %v4080_v0 = vadd.f32 %v4053_v54, %v3963_v10 }
 0x297   :  { %1037 = vrot.lane.b32.xlu0 %v1029_v35, %s3594_s11  ;;  %v3168_v38 = vpop.f32.mrb[8].mxu0  ;;  %v4084_v4 = vadd.f32 %v4069_v58, %v3959_v6  ;;  %v4088_v7 = vadd.f32 %v4071_v59, %v3963_v10  ;;  %v4092_v25 = vadd.f32 %v2015_v60, %v3959_v6  ;;  %v4095_v26 = vadd.f32 %v2014_v61, %v3963_v10  ;;  %v2242_v35 = vld [vmem:[#allocation2 + $0xd0] sm:$0xff]  ;;  %v2469_v60 = vld [vmem:[#allocation2 + $0xf8] sm:$0xff] }
 0x298   :  { %v1000_v44 = vadd.f32 %v3168_v38, %v996_v36  ;;  %v984_v45 = vpop.f32.mrb[9].mxu0  ;;  %v1032_v62 = vadd.f32 %v3168_v38, %v3955_v1  ;;  %v4098_v36 = vadd.f32 %v2017_v2, %v3959_v6  ;;  %v4101_v38 = vadd.f32 %v2016_v3, %v3963_v10 }
 0x299   :  { %v999_v50 = vadd.f32 %v995_v39, %v984_v45  ;;  %v1031_v51 = vadd.f32 %v3955_v1, %v984_v45  ;;  %4571 = vst [vmem:[#allocation3_spill] sm:$0xff] %v4095_v26  ;;  %v2467_v39 = vld [vmem:[#allocation2 + $0xe8] sm:$0xff]  ;;  %v4104_v45 = vadd.f32 %v2241_v8, %v3959_v6  ;;  %v4110_v61 = vadd.f32 %v2243_v29, %v3959_v6 }
 0x29a   :  { %v4113_v26 = vadd.f32 %v2242_v35, %v3963_v10  ;;  %v4116_v2 = vadd.f32 %v2467_v39, %v3959_v6  ;;  %v4122_v8 = vadd.f32 %v2469_v60, %v3959_v6  ;;  %v2864_v35 = vmul.f32 -1.442695, %v1000_v44 }
 0x29b   :  { %1039 = vrot.lane.b32.xlu0 %v1030_v49, %s3594_s11  ;;  %1041 = vrot.lane.b32.xlu1 %v1031_v51, %s3594_s11  ;;  %4572 = vst [vmem:[#allocation4_spill] sm:$0xff] %v4104_v45  ;;  %v4107_v49 = vadd.f32 %v2240_v24, %v3963_v10  ;;  %v2466_v51 = vld [vmem:[#allocation2 + $0xe0] sm:$0xff]  ;;  %v2862_v45 = vmul.f32 -1.442695, %v4001_v28  ;;  %v2863_v29 = vmul.f32 -1.442695, %v999_v50 }
 0x29c   :  { %4574 = vst [vmem:[#allocation6_spill] sm:$0xff] %v4113_v26  ;;  %4575 = vst [vmem:[#allocation7_spill] sm:$0xff] %v4116_v2  ;;  %v4119_v3 = vadd.f32 %v2466_v51, %v3963_v10 }
 0x29d   :  { %4573 = vst [vmem:[#allocation5_spill] sm:$0xff] %v4107_v49  ;;  %v2861_v49 = vmul.f32 -1.442695, %v997_v14 }
 0x29e   :  { %4576 = vst [vmem:[#allocation8_spill] sm:$0xff] %v4119_v3 }
 0x29f   :  { %1043 = vrot.lane.b32.xlu1 %v1032_v62, %s3594_s11  ;;  %v2468_v62 = vld [vmem:[#allocation2 + $0xf0] sm:$0xff]  ;;  %3386 = vpow2.f32 %v2861_v49 }
 0x2a0   :  { %v4125_v24 = vadd.f32 %v2468_v62, %v3963_v10  ;;  %3388 = vpow2.f32 %v2862_v45 }
 0x2a1   :  { %3390 = vpow2.f32 %v2863_v29 }
 0x2a2   :  { %3392 = vpow2.f32 %v2864_v35 }
 0x2a9   :  { %v3387_v39 = vpop.eup %3386 }
 0x2aa   :  { %v3389_v2 = vpop.eup %3388  ;;  %v1013_v26 = vadd.f32 1.0, %v3387_v39 }
 0x2ab   :  { %v3391_v51 = vpop.eup %3390  ;;  %v1014_v3 = vadd.f32 1.0, %v3389_v2 }
 0x2ac   :  { %3394 = vrcp.f32 %v1013_v26  ;;  %v1015_v6 = vadd.f32 1.0, %v3391_v51  ;;  %v3393_v60 = vpop.eup %3392 }
 0x2ad   :  { %3396 = vrcp.f32 %v1014_v3  ;;  %v1016_v10 = vadd.f32 1.0, %v3393_v60 }
 0x2ae   :  { %3398 = vrcp.f32 %v1015_v6 }
 0x2af   :  { %3400 = vrcp.f32 %v1016_v10 }
 0x2b6   :  { %v3395_v14 = vpop.eup %3394 }
 0x2b7   :  { %v3397_v50 = vpop.eup %3396 }
 0x2b8   :  { %v3399_v44 = vpop.eup %3398 }
 0x2b9   :  { %v3401_v26 = vpop.eup %3400 }
 0x309   :  { %v1038_v28 = vpop.permute.xlu0 %1037 }
 0x30a   :  { %v1049_v49 = vmul.f32 %v3395_v14, %v1038_v28 }
 0x30c   :  { %1057 = vrot.lane.b32.xlu0 %v1049_v49, %s3594_s11 }
 0x30d   :  { %v1040_v45 = vpop.permute.xlu0 %1039  ;;  %v1042_v62 = vpop.permute.xlu1 %1041 }
 0x30e   :  { %v1050_v29 = vmul.f32 %v3397_v50, %v1040_v45  ;;  %v1051_v35 = vmul.f32 %v3399_v44, %v1042_v62 }
 0x310   :  { %1059 = vrot.lane.b32.xlu1 %v1050_v29, %s3594_s11  ;;  %1061 = vrot.lane.b32.xlu0 %v1051_v35, %s3594_s11 }
 0x311   :  { %v1044_v2 = vpop.permute.xlu1 %1043 }
 0x312   :  { %v1052_v3 = vmul.f32 %v3401_v26, %v1044_v2  ;;  %v1101_v2 = vmul.f32 0.0, %v3395_v14 }
 0x314   :  { %1063 = vrot.lane.b32.xlu1 %v1052_v3, %s3594_s11 }
 0x37e   :  { %v1058_v39 = vpop.permute.xlu0 %1057 }
 0x37f   :  { %v1069_v51 = vadd.f32 %v1058_v39, %v3984_v18 }
 0x381   :  { %3402 = vtanh.f32 %v1069_v51 }
 0x382   :  { %v1060_v6 = vpop.permute.xlu1 %1059  ;;  %v1062_v60 = vpop.permute.xlu0 %1061 }
 0x383   :  { %v1070_v10 = vadd.f32 %v1060_v6, %v3970_v13  ;;  %v1071_v28 = vadd.f32 %v1062_v60, %v3987_v19  ;;  %v1077_v13 = vsub.f32 1.0, %v3395_v14  ;;  %v1079_v6 = vsub.f32 1.0, %v3399_v44 }
 0x384   :  { %v1102_v60 = vmul.f32 0.0, %v3397_v50 }
 0x385   :  { %3404 = vtanh.f32 %v1070_v10 }
 0x386   :  { %3406 = vtanh.f32 %v1071_v28  ;;  %v1064_v49 = vpop.permute.xlu1 %1063 }
 0x387   :  { %v1072_v45 = vadd.f32 %v1064_v49, %v3973_v15  ;;  %v1078_v15 = vsub.f32 1.0, %v3397_v50  ;;  %v1103_v49 = vmul.f32 0.0, %v3399_v44 }
 0x389   :  { %3408 = vtanh.f32 %v1072_v45 }
 0x38b   :  { %v3403_v62 = vpop.eup %3402 }
 0x38c   :  { %1085 = vrot.lane.b32.xlu0 %v3403_v62, %s3595_s30 }
 0x38f   :  { %v3405_v29 = vpop.eup %3404 }
 0x390   :  { %v3407_v35 = vpop.eup %3406  ;;  %1087 = vrot.lane.b32.xlu1 %v3405_v29, %s3595_s30  ;;  %v1080_v29 = vsub.f32 1.0, %v3401_v26 }
 0x391   :  { %1089 = vrot.lane.b32.xlu0 %v3407_v35, %s3595_s30 }
 0x393   :  { %v3409_v18 = vpop.eup %3408 }
 0x394   :  { %1091 = vrot.lane.b32.xlu1 %v3409_v18, %s3595_s30  ;;  %v1104_v18 = vmul.f32 0.0, %v3401_v26 }
 0x3fe   :  { %v1086_v19 = vpop.permute.xlu0 %1085 }
 0x3ff   :  { %v1097_v3 = vmul.f32 %v1086_v19, %v1077_v13 }
 0x401   :  { %v4140_v39 = vadd.f32 %v1101_v2, %v1097_v3  ;;  %v1220_v3 = vadd.f32 %v3957_v5, %v3967_v11  ;;  %v1221_v5 = vadd.f32 %v3991_v21, %v3981_v17 }
 0x402   :  { %v1088_v51 = vpop.permute.xlu1 %1087 }
 0x403   :  { %v1098_v10 = vmul.f32 %v1088_v51, %v1078_v15  ;;  %v1090_v28 = vpop.permute.xlu0 %1089  ;;  %1118 = vrot.lane.b32.xlu0 %v4140_v39, %s3595_s30  ;;  %v1219_v51 = vadd.f32 %v3961_v9, %v3981_v17 }
 0x404   :  { %v1099_v45 = vmul.f32 %v1090_v28, %v1079_v6 }
 0x405   :  { %v4144_v62 = vadd.f32 %v1102_v60, %v1098_v10 }
 0x406   :  { %v4146_v35 = vadd.f32 %v1103_v49, %v1099_v45  ;;  %v1092_v14 = vpop.permute.xlu1 %1091  ;;  %v1222_v45 = vadd.f32 %v3989_v20, %v3967_v11 }
 0x407   :  { %v1100_v13 = vmul.f32 %v1092_v14, %v1080_v29  ;;  %1120 = vrot.lane.b32.xlu1 %v4144_v62, %s3595_s30 }
 0x408   :  { %1122 = vrot.lane.b32.xlu0 %v4146_v35, %s3595_s30 }
 0x409   :  { %v4152_v50 = vadd.f32 %v1104_v18, %v1100_v13 }
 0x40b   :  { %1124 = vrot.lane.b32.xlu1 %v4152_v50, %s3595_s30 }
 0x475   :  { %v1119_v44 = vpop.permute.xlu0 %1118 }
 0x476   :  { %3177 = vmatprep.mubr.msk.f32.mxu0 %vm167_vm3, %v1119_v44 }
 0x479   :  { %v1121_v19 = vpop.permute.xlu1 %1120 }
 0x47a   :  { %v1123_v2 = vpop.permute.xlu0 %1122  ;;  %3178 = vmatmul.mubr.msk.f32.vlgmr.msra.gmra.mrb[10].mxu0 %vm167_vm3, %v1121_v19 }
 0x47b   :  { %3180 = vmatprep.mubr.msk.f32.mxu0 %vm167_vm3, %v1123_v2  ;;  %3328 = vmatpush3.bf16.msra.mxu0 %v3886_v12 }
 0x47c   :  { %3330 = vmatprep.subr.bf16.mxu0 %v3898_v23 }
 0x47d   :  { %v1125_v26 = vpop.permute.xlu1 %1124 }
 0x47e   :  { %3181 = vmatmul.mubr.msk.f32.gmra.mrb[12].mxu0 %vm167_vm3, %v1125_v26 }
 0x47f   :  { %3332 = vmatpush3.bf16.msra.mxu0 %v3898_v23 }
 0x480   :  { %3334 = vmatprep.subr.bf16.mxu0 %v3886_v12 }
 0x54d   :  { %v3179_v15 = vpop.f32.mrb[10].mxu0 }
 0x54e   :  { %v1224_v6 = vadd.f32 %v3179_v15, %v1220_v3  ;;  %v1256_v60 = vadd.f32 %v3179_v15, %v3955_v1  ;;  %v1200_v10 = vpop.f32.mrb[11].mxu0 }
 0x54f   :  { %v1223_v28 = vadd.f32 %v1219_v51, %v1200_v10  ;;  %v1255_v49 = vadd.f32 %v3955_v1, %v1200_v10 }
 0x550   :  { %1265 = vrot.lane.b32.xlu1 %v1256_v60, %s3594_s11  ;;  %v2870_v19 = vmul.f32 -1.442695, %v1224_v6 }
 0x551   :  { %1263 = vrot.lane.b32.xlu0 %v1255_v49, %s3594_s11  ;;  %v3182_v29 = vpop.f32.mrb[12].mxu0  ;;  %v2869_v2 = vmul.f32 -1.442695, %v1223_v28 }
 0x552   :  { %v1226_v14 = vadd.f32 %v3182_v29, %v1222_v45  ;;  %v1258_v9 = vadd.f32 %v3182_v29, %v3955_v1  ;;  %v1210_v18 = vpop.f32.mrb[13].mxu0  ;;  %3410 = vpow2.f32 %v2870_v19 }
 0x553   :  { %v1225_v13 = vadd.f32 %v1221_v5, %v1210_v18  ;;  %v1257_v44 = vadd.f32 %v3955_v1, %v1210_v18  ;;  %3412 = vpow2.f32 %v2869_v2 }
 0x554   :  { %1269 = vrot.lane.b32.xlu1 %v1258_v9, %s3594_s11  ;;  %v2872_v20 = vmul.f32 -1.442695, %v1226_v14 }
 0x555   :  { %1267 = vrot.lane.b32.xlu0 %v1257_v44, %s3594_s11  ;;  %v2871_v26 = vmul.f32 -1.442695, %v1225_v13 }
 0x556   :  { %3414 = vpow2.f32 %v2872_v20 }
 0x557   :  { %3416 = vpow2.f32 %v2871_v26 }
 0x55c   :  { %v3411_v21 = vpop.eup %3410 }
 0x55d   :  { %v3413_v3 = vpop.eup %3412  ;;  %v1240_v15 = vadd.f32 1.0, %v3411_v21 }
 0x55e   :  { %v1239_v60 = vadd.f32 1.0, %v3413_v3 }
 0x55f   :  { %3418 = vrcp.f32 %v1240_v15 }
 0x560   :  { %v3415_v51 = vpop.eup %3414  ;;  %3420 = vrcp.f32 %v1239_v60 }
 0x561   :  { %v3417_v10 = vpop.eup %3416  ;;  %v1242_v49 = vadd.f32 1.0, %v3415_v51 }
 0x562   :  { %v1241_v45 = vadd.f32 1.0, %v3417_v10 }
 0x563   :  { %3422 = vrcp.f32 %v1242_v49 }
 0x564   :  { %3424 = vrcp.f32 %v1241_v45 }
 0x569   :  { %v3419_v6 = vpop.eup %3418 }
 0x56a   :  { %v3421_v29 = vpop.eup %3420 }
 0x56d   :  { %v3423_v18 = vpop.eup %3422 }
 0x56e   :  { %v3425_v44 = vpop.eup %3424 }
 0x5c2   :  { %v1266_v28 = vpop.permute.xlu1 %1265 }
 0x5c3   :  { %v1276_v5 = vmul.f32 %v3419_v6, %v1266_v28  ;;  %v1264_v14 = vpop.permute.xlu0 %1263 }
 0x5c4   :  { %v1275_v9 = vmul.f32 %v3421_v29, %v1264_v14 }
 0x5c5   :  { %1285 = vrot.lane.b32.xlu1 %v1276_v5, %s3594_s11 }
 0x5c6   :  { %v1270_v13 = vpop.permute.xlu1 %1269  ;;  %1283 = vrot.lane.b32.xlu0 %v1275_v9, %s3594_s11  ;;  %v1328_v9 = vmul.f32 %v3419_v6, %v4144_v62  ;;  %v1329_v62 = vmul.f32 %v3425_v44, %v4146_v35 }
 0x5c7   :  { %v1278_v19 = vmul.f32 %v3423_v18, %v1270_v13  ;;  %v1268_v2 = vpop.permute.xlu0 %1267 }
 0x5c8   :  { %v1277_v20 = vmul.f32 %v3425_v44, %v1268_v2 }
 0x5c9   :  { %1289 = vrot.lane.b32.xlu1 %v1278_v19, %s3594_s11  ;;  %v1327_v19 = vmul.f32 %v3421_v29, %v4140_v39 }
 0x5ca   :  { %1287 = vrot.lane.b32.xlu0 %v1277_v20, %s3594_s11 }
 0x637   :  { %v1286_v26 = vpop.permute.xlu1 %1285 }
 0x638   :  { %v1296_v21 = vadd.f32 %v1286_v26, %v3977_v16  ;;  %v1284_v3 = vpop.permute.xlu0 %1283  ;;  %v1306_v26 = vsub.f32 1.0, %v3423_v18 }
 0x639   :  { %v1295_v15 = vadd.f32 %v1284_v3, %v3995_v22  ;;  %v1304_v22 = vsub.f32 1.0, %v3419_v6 }
 0x63a   :  { %3426 = vtanh.f32 %v1296_v21 }
 0x63b   :  { %3428 = vtanh.f32 %v1295_v15  ;;  %v1290_v51 = vpop.permute.xlu1 %1289  ;;  %v1305_v15 = vsub.f32 1.0, %v3425_v44 }
 0x63c   :  { %v1298_v60 = vadd.f32 %v1290_v51, %v4005_v30  ;;  %v1288_v10 = vpop.permute.xlu0 %1287  ;;  %v1303_v30 = vsub.f32 1.0, %v3421_v29  ;;  %v1330_v51 = vmul.f32 %v3423_v18, %v4152_v50 }
 0x63d   :  { %v1297_v49 = vadd.f32 %v1288_v10, %v4009_v31 }
 0x63e   :  { %3430 = vtanh.f32 %v1298_v60 }
 0x63f   :  { %3432 = vtanh.f32 %v1297_v49  ;;  %v1446_v49 = vadd.f32 %v3999_v27, %v3967_v11  ;;  %v1447_v27 = vadd.f32 %v4015_v34, %v3981_v17 }
 0x644   :  { %v3427_v45 = vpop.eup %3426 }
 0x645   :  { %v3429_v28 = vpop.eup %3428  ;;  %1313 = vrot.lane.b32.xlu1 %v3427_v45, %s3595_s30 }
 0x646   :  { %1311 = vrot.lane.b32.xlu0 %v3429_v28, %s3595_s30  ;;  %v1445_v28 = vadd.f32 %v4011_v32, %v3981_v17 }
 0x648   :  { %v3431_v16 = vpop.eup %3430 }
 0x649   :  { %v3433_v5 = vpop.eup %3432  ;;  %1317 = vrot.lane.b32.xlu1 %v3431_v16, %s3595_s30 }
 0x64a   :  { %1315 = vrot.lane.b32.xlu0 %v3433_v5, %s3595_s30 }
 0x6b7   :  { %v1314_v14 = vpop.permute.xlu1 %1313 }
 0x6b8   :  { %v1324_v31 = vmul.f32 %v1314_v14, %v1304_v22  ;;  %v1312_v13 = vpop.permute.xlu0 %1311 }
 0x6b9   :  { %v1323_v2 = vmul.f32 %v1312_v13, %v1303_v30 }
 0x6ba   :  { %v4194_v20 = vadd.f32 %v1328_v9, %v1324_v31  ;;  %v1448_v9 = vadd.f32 %v4013_v33, %v3967_v11 }
 0x6bb   :  { %v4196_v21 = vadd.f32 %v1327_v19, %v1323_v2  ;;  %v1318_v3 = vpop.permute.xlu1 %1317 }
 0x6bc   :  { %v1326_v60 = vmul.f32 %v1318_v3, %v1306_v26  ;;  %1346 = vrot.lane.b32.xlu1 %v4194_v20, %s3595_s30  ;;  %v1316_v10 = vpop.permute.xlu0 %1315 }
 0x6bd   :  { %v1325_v6 = vmul.f32 %v1316_v10, %v1305_v15  ;;  %1344 = vrot.lane.b32.xlu0 %v4196_v21, %s3595_s30 }
 0x6be   :  { %v4204_v39 = vadd.f32 %v1330_v51, %v1326_v60 }
 0x6bf   :  { %v4206_v29 = vadd.f32 %v1329_v62, %v1325_v6 }
 0x6c0   :  { %1350 = vrot.lane.b32.xlu1 %v4204_v39, %s3595_s30 }
 0x6c1   :  { %1348 = vrot.lane.b32.xlu0 %v4206_v29, %s3595_s30 }
 0x72e   :  { %v1347_v50 = vpop.permute.xlu1 %1346 }
 0x72f   :  { %v1345_v18 = vpop.permute.xlu0 %1344 }
 0x730   :  { %3191 = vmatprep.mubr.msk.f32.mxu0 %vm167_vm3, %v1345_v18 }
 0x731   :  { %3192 = vmatmul.mubr.msk.f32.vlgmr.msra.gmra.mrb[14].mxu0 %vm167_vm3, %v1347_v50 }
 0x732   :  { %3336 = vmatpush3.bf16.msra.mxu0 %v3886_v12  ;;  %v1351_v44 = vpop.permute.xlu1 %1350 }
 0x733   :  { %v1349_v35 = vpop.permute.xlu0 %1348  ;;  %3338 = vmatprep.subr.bf16.mxu0 %v3898_v23 }
 0x734   :  { %3194 = vmatprep.mubr.msk.f32.mxu0 %vm167_vm3, %v1349_v35 }
 0x735   :  { %3195 = vmatmul.mubr.msk.f32.gmra.mrb[16].mxu0 %vm167_vm3, %v1351_v44 }
 0x736   :  { %3340 = vmatpush3.bf16.msra.mxu0 %v3898_v23 }
 0x737   :  { %3342 = vmatprep.subr.bf16.mxu0 %v3886_v12 }
 0x804   :  { %v3193_v45 = vpop.f32.mrb[14].mxu0 }
 0x805   :  { %v1450_v16 = vadd.f32 %v3193_v45, %v1446_v49  ;;  %v1482_v5 = vadd.f32 %v3193_v45, %v3955_v1  ;;  %v1426_v22 = vpop.f32.mrb[15].mxu0 }
 0x806   :  { %v1449_v14 = vadd.f32 %v1445_v28, %v1426_v22  ;;  %v1481_v30 = vadd.f32 %v3955_v1, %v1426_v22 }
 0x807   :  { %1491 = vrot.lane.b32.xlu1 %v1482_v5, %s3594_s11  ;;  %v2878_v3 = vmul.f32 -1.442695, %v1450_v16 }
 0x808   :  { %1489 = vrot.lane.b32.xlu0 %v1481_v30, %s3594_s11  ;;  %v3196_v31 = vpop.f32.mrb[16].mxu0  ;;  %v2877_v15 = vmul.f32 -1.442695, %v1449_v14 }
 0x809   :  { %v1452_v13 = vadd.f32 %v3196_v31, %v1448_v9  ;;  %v1484_v32 = vadd.f32 %v3196_v31, %v3955_v1  ;;  %v1436_v19 = vpop.f32.mrb[17].mxu0  ;;  %3434 = vpow2.f32 %v2878_v3 }
 0x80a   :  { %v1451_v2 = vadd.f32 %v1447_v27, %v1436_v19  ;;  %v1483_v26 = vadd.f32 %v3955_v1, %v1436_v19  ;;  %3436 = vpow2.f32 %v2877_v15 }
 0x80b   :  { %1495 = vrot.lane.b32.xlu1 %v1484_v32, %s3594_s11  ;;  %v2880_v33 = vmul.f32 -1.442695, %v1452_v13 }
 0x80c   :  { %1493 = vrot.lane.b32.xlu0 %v1483_v26, %s3594_s11  ;;  %v2879_v51 = vmul.f32 -1.442695, %v1451_v2 }
 0x80d   :  { %3438 = vpow2.f32 %v2880_v33 }
 0x80e   :  { %3440 = vpow2.f32 %v2879_v51 }
 0x813   :  { %v3435_v34 = vpop.eup %3434 }
 0x814   :  { %v3437_v60 = vpop.eup %3436  ;;  %v1466_v10 = vadd.f32 1.0, %v3435_v34 }
 0x815   :  { %v1465_v6 = vadd.f32 1.0, %v3437_v60 }
 0x816   :  { %3442 = vrcp.f32 %v1466_v10 }
 0x817   :  { %v3439_v62 = vpop.eup %3438  ;;  %3444 = vrcp.f32 %v1465_v6 }
 0x818   :  { %v3441_v50 = vpop.eup %3440  ;;  %v1468_v18 = vadd.f32 1.0, %v3439_v62 }
 0x819   :  { %v1467_v35 = vadd.f32 1.0, %v3441_v50 }
 0x81a   :  { %3446 = vrcp.f32 %v1468_v18 }
 0x81b   :  { %3448 = vrcp.f32 %v1467_v35 }
 0x820   :  { %v3443_v44 = vpop.eup %3442 }
 0x821   :  { %v3445_v45 = vpop.eup %3444  ;;  %v1554_v62 = vmul.f32 %v3443_v44, %v4194_v20 }
 0x822   :  { %v1553_v50 = vmul.f32 %v3445_v45, %v4196_v21 }
 0x824   :  { %v3447_v22 = vpop.eup %3446 }
 0x825   :  { %v3449_v30 = vpop.eup %3448 }
 0x826   :  { %v1555_v20 = vmul.f32 %v3449_v30, %v4206_v29 }
 0x879   :  { %v1492_v49 = vpop.permute.xlu1 %1491 }
 0x87a   :  { %v1502_v28 = vmul.f32 %v3443_v44, %v1492_v49  ;;  %v1490_v16 = vpop.permute.xlu0 %1489  ;;  %v1532_v49 = vsub.f32 1.0, %v3447_v22 }
 0x87b   :  { %v1501_v5 = vmul.f32 %v3445_v45, %v1490_v16 }
 0x87c   :  { %1511 = vrot.lane.b32.xlu1 %v1502_v28, %s3594_s11 }
 0x87d   :  { %v1496_v14 = vpop.permute.xlu1 %1495  ;;  %1509 = vrot.lane.b32.xlu0 %v1501_v5, %s3594_s11  ;;  %v1531_v5 = vsub.f32 1.0, %v3449_v30 }
 0x87e   :  { %v1504_v9 = vmul.f32 %v3447_v22, %v1496_v14  ;;  %v1494_v31 = vpop.permute.xlu0 %1493  ;;  %v1556_v14 = vmul.f32 %v3447_v22, %v4204_v39 }
 0x87f   :  { %v1503_v27 = vmul.f32 %v3449_v30, %v1494_v31 }
 0x880   :  { %1515 = vrot.lane.b32.xlu1 %v1504_v9, %s3594_s11 }
 0x881   :  { %1513 = vrot.lane.b32.xlu0 %v1503_v27, %s3594_s11  ;;  %v1672_v27 = vadd.f32 %v4037_v43, %v3967_v11  ;;  %v1673_v43 = vadd.f32 %v4043_v48, %v3981_v17 }
 0x8ee   :  { %v1512_v13 = vpop.permute.xlu1 %1511 }
 0x8ef   :  { %v1522_v32 = vadd.f32 %v1512_v13, %v4021_v37  ;;  %v1510_v19 = vpop.permute.xlu0 %1509 }
 0x8f0   :  { %v1521_v2 = vadd.f32 %v1510_v19, %v4027_v40  ;;  %v1530_v40 = vsub.f32 1.0, %v3443_v44 }
 0x8f1   :  { %3450 = vtanh.f32 %v1522_v32  ;;  %v1671_v32 = vadd.f32 %v4039_v46, %v3981_v17 }
 0x8f2   :  { %3452 = vtanh.f32 %v1521_v2  ;;  %v1516_v26 = vpop.permute.xlu1 %1515 }
 0x8f3   :  { %v1524_v3 = vadd.f32 %v1516_v26, %v4031_v41  ;;  %v1514_v15 = vpop.permute.xlu0 %1513  ;;  %v1529_v41 = vsub.f32 1.0, %v3445_v45 }
 0x8f4   :  { %v1523_v33 = vadd.f32 %v1514_v15, %v4035_v42 }
 0x8f5   :  { %3454 = vtanh.f32 %v1524_v3 }
 0x8f6   :  { %3456 = vtanh.f32 %v1523_v33  ;;  %v1674_v33 = vadd.f32 %v4041_v47, %v3967_v11 }
 0x8fb   :  { %v3451_v51 = vpop.eup %3450 }
 0x8fc   :  { %v3453_v34 = vpop.eup %3452  ;;  %1539 = vrot.lane.b32.xlu1 %v3451_v51, %s3595_s30 }
 0x8fd   :  { %1537 = vrot.lane.b32.xlu0 %v3453_v34, %s3595_s30 }
 0x8ff   :  { %v3455_v37 = vpop.eup %3454 }
 0x900   :  { %v3457_v60 = vpop.eup %3456  ;;  %1543 = vrot.lane.b32.xlu1 %v3455_v37, %s3595_s30 }
 0x901   :  { %1541 = vrot.lane.b32.xlu0 %v3457_v60, %s3595_s30 }
 0x96e   :  { %v1540_v10 = vpop.permute.xlu1 %1539 }
 0x96f   :  { %v1550_v42 = vmul.f32 %v1540_v10, %v1530_v40  ;;  %v1538_v6 = vpop.permute.xlu0 %1537 }
 0x970   :  { %v1549_v18 = vmul.f32 %v1538_v6, %v1529_v41 }
 0x971   :  { %v4250_v35 = vadd.f32 %v1554_v62, %v1550_v42 }
 0x972   :  { %v4252_v28 = vadd.f32 %v1553_v50, %v1549_v18  ;;  %v1544_v16 = vpop.permute.xlu1 %1543 }
 0x973   :  { %v1552_v9 = vmul.f32 %v1544_v16, %v1532_v49  ;;  %1572 = vrot.lane.b32.xlu1 %v4250_v35, %s3595_s30  ;;  %v1542_v31 = vpop.permute.xlu0 %1541 }
 0x974   :  { %v1551_v44 = vmul.f32 %v1542_v31, %v1531_v5  ;;  %1570 = vrot.lane.b32.xlu0 %v4252_v28, %s3595_s30 }
 0x975   :  { %v4260_v21 = vadd.f32 %v1556_v14, %v1552_v9 }
 0x976   :  { %v4262_v45 = vadd.f32 %v1555_v20, %v1551_v44 }
 0x977   :  { %1576 = vrot.lane.b32.xlu1 %v4260_v21, %s3595_s30 }
 0x978   :  { %1574 = vrot.lane.b32.xlu0 %v4262_v45, %s3595_s30 }
 0x9e5   :  { %v1573_v39 = vpop.permute.xlu1 %1572 }
 0x9e6   :  { %v1571_v22 = vpop.permute.xlu0 %1570 }
 0x9e7   :  { %3205 = vmatprep.mubr.msk.f32.mxu0 %vm167_vm3, %v1571_v22 }
 0x9e8   :  { %3206 = vmatmul.mubr.msk.f32.vlgmr.msra.gmra.mrb[18].mxu0 %vm167_vm3, %v1573_v39 }
 0x9e9   :  { %3344 = vmatpush3.bf16.msra.mxu0 %v3886_v12  ;;  %v1577_v30 = vpop.permute.xlu1 %1576 }
 0x9ea   :  { %v1575_v29 = vpop.permute.xlu0 %1574  ;;  %3346 = vmatprep.subr.bf16.mxu0 %v3898_v23 }
 0x9eb   :  { %3208 = vmatprep.mubr.msk.f32.mxu0 %vm167_vm3, %v1575_v29 }
 0x9ec   :  { %3209 = vmatmul.mubr.msk.f32.gmra.mrb[20].mxu0 %vm167_vm3, %v1577_v30 }
 0x9ed   :  { %3348 = vmatpush3.bf16.msra.mxu0 %v3898_v23 }
 0x9ee   :  { %3350 = vmatprep.subr.bf16.mxu0 %v3886_v12 }
 0xabb   :  { %v3207_v13 = vpop.f32.mrb[18].mxu0 }
 0xabc   :  { %v1676_v19 = vadd.f32 %v3207_v13, %v1672_v27  ;;  %v1708_v2 = vadd.f32 %v3207_v13, %v3955_v1  ;;  %v1652_v26 = vpop.f32.mrb[19].mxu0 }
 0xabd   :  { %v1675_v3 = vadd.f32 %v1671_v32, %v1652_v26  ;;  %v1707_v15 = vadd.f32 %v3955_v1, %v1652_v26 }
 0xabe   :  { %1717 = vrot.lane.b32.xlu1 %v1708_v2, %s3594_s11  ;;  %v2886_v10 = vmul.f32 -1.442695, %v1676_v19 }
 0xabf   :  { %1715 = vrot.lane.b32.xlu0 %v1707_v15, %s3594_s11  ;;  %v3210_v51 = vpop.f32.mrb[20].mxu0  ;;  %v2885_v41 = vmul.f32 -1.442695, %v1675_v3 }
 0xac0   :  { %v1678_v34 = vadd.f32 %v3210_v51, %v1674_v33  ;;  %v1710_v46 = vadd.f32 %v3210_v51, %v3955_v1  ;;  %v1662_v37 = vpop.f32.mrb[21].mxu0  ;;  %3458 = vpow2.f32 %v2886_v10 }
 0xac1   :  { %v1677_v60 = vadd.f32 %v1673_v43, %v1662_v37  ;;  %v1709_v40 = vadd.f32 %v3955_v1, %v1662_v37  ;;  %3460 = vpow2.f32 %v2885_v41 }
 0xac2   :  { %1721 = vrot.lane.b32.xlu1 %v1710_v46, %s3594_s11  ;;  %v2888_v47 = vmul.f32 -1.442695, %v1678_v34 }
 0xac3   :  { %1719 = vrot.lane.b32.xlu0 %v1709_v40, %s3594_s11  ;;  %v2887_v62 = vmul.f32 -1.442695, %v1677_v60 }
 0xac4   :  { %3462 = vpow2.f32 %v2888_v47 }
 0xac5   :  { %3464 = vpow2.f32 %v2887_v62 }
 0xaca   :  { %v3459_v48 = vpop.eup %3458 }
 0xacb   :  { %v3461_v42 = vpop.eup %3460  ;;  %v1692_v6 = vadd.f32 1.0, %v3459_v48 }
 0xacc   :  { %v1691_v18 = vadd.f32 1.0, %v3461_v42 }
 0xacd   :  { %3466 = vrcp.f32 %v1692_v6 }
 0xace   :  { %v3463_v50 = vpop.eup %3462  ;;  %3468 = vrcp.f32 %v1691_v18 }
 0xacf   :  { %v3465_v49 = vpop.eup %3464  ;;  %v1694_v1 = vadd.f32 1.0, %v3463_v50 }
 0xad0   :  { %v1693_v16 = vadd.f32 1.0, %v3465_v49 }
 0xad1   :  { %3470 = vrcp.f32 %v1694_v1 }
 0xad2   :  { %3472 = vrcp.f32 %v1693_v16 }
 0xad7   :  { %v3467_v5 = vpop.eup %3466 }
 0xad8   :  { %v3469_v9 = vpop.eup %3468  ;;  %v1780_v60 = vmul.f32 %v3467_v5, %v4250_v35 }
 0xad9   :  { %v1779_v10 = vmul.f32 %v3469_v9, %v4252_v28 }
 0xadb   :  { %v3471_v39 = vpop.eup %3470 }
 0xadc   :  { %v3473_v29 = vpop.eup %3472  ;;  %v1758_v62 = vsub.f32 1.0, %v3471_v39  ;;  %v1782_v50 = vmul.f32 %v3471_v39, %v4260_v21 }
 0xadd   :  { %v1757_v6 = vsub.f32 1.0, %v3473_v29  ;;  %v1781_v35 = vmul.f32 %v3473_v29, %v4262_v45 }
 0xb30   :  { %v1718_v14 = vpop.permute.xlu1 %1717 }
 0xb31   :  { %v1728_v31 = vmul.f32 %v3467_v5, %v1718_v14  ;;  %v1716_v20 = vpop.permute.xlu0 %1715 }
 0xb32   :  { %v1727_v44 = vmul.f32 %v3469_v9, %v1716_v20  ;;  %v1897_v20 = vadd.f32 %v4053_v54, %v3981_v17 }
 0xb33   :  { %1737 = vrot.lane.b32.xlu1 %v1728_v31, %s3594_s11 }
 0xb34   :  { %v1722_v22 = vpop.permute.xlu1 %1721  ;;  %1735 = vrot.lane.b32.xlu0 %v1727_v44, %s3594_s11 }
 0xb35   :  { %v1730_v30 = vmul.f32 %v3471_v39, %v1722_v22  ;;  %v1720_v27 = vpop.permute.xlu0 %1719  ;;  %v4339_v39 = vld [vmem:[%s4567_s12] ss:$0 sm:$0xff] }
 0xb36   :  { %v1729_v13 = vmul.f32 %v3473_v29, %v1720_v27 }
 0xb37   :  { %1741 = vrot.lane.b32.xlu1 %v1730_v30, %s3594_s11 }
 0xb38   :  { %1739 = vrot.lane.b32.xlu0 %v1729_v13, %s3594_s11  ;;  %v1899_v13 = vadd.f32 %v4071_v59, %v3981_v17 }
 0xba5   :  { %v1738_v32 = vpop.permute.xlu1 %1737 }
 0xba6   :  { %v1748_v19 = vadd.f32 %v1738_v32, %v4049_v52  ;;  %v1736_v2 = vpop.permute.xlu0 %1735 }
 0xba7   :  { %v1747_v26 = vadd.f32 %v1736_v2, %v4059_v55  ;;  %v1756_v55 = vsub.f32 1.0, %v3467_v5 }
 0xba8   :  { %3474 = vtanh.f32 %v1748_v19 }
 0xba9   :  { %3476 = vtanh.f32 %v1747_v26  ;;  %v1742_v3 = vpop.permute.xlu1 %1741 }
 0xbaa   :  { %v1750_v15 = vadd.f32 %v1742_v3, %v4063_v56  ;;  %v1740_v33 = vpop.permute.xlu0 %1739  ;;  %v1755_v56 = vsub.f32 1.0, %v3469_v9  ;;  %v1898_v9 = vadd.f32 %v4051_v53, %v3967_v11  ;;  %v1900_v53 = vadd.f32 %v4069_v58, %v3967_v11 }
 0xbab   :  { %v1749_v51 = vadd.f32 %v1740_v33, %v4067_v57 }
 0xbac   :  { %3478 = vtanh.f32 %v1750_v15 }
 0xbad   :  { %3480 = vtanh.f32 %v1749_v51 }
 0xbb2   :  { %v3475_v43 = vpop.eup %3474 }
 0xbb3   :  { %v3477_v34 = vpop.eup %3476  ;;  %1765 = vrot.lane.b32.xlu1 %v3475_v43, %s3595_s30 }
 0xbb4   :  { %1763 = vrot.lane.b32.xlu0 %v3477_v34, %s3595_s30 }
 0xbb6   :  { %v3479_v52 = vpop.eup %3478 }
 0xbb7   :  { %v3481_v46 = vpop.eup %3480  ;;  %1769 = vrot.lane.b32.xlu1 %v3479_v52, %s3595_s30 }
 0xbb8   :  { %1767 = vrot.lane.b32.xlu0 %v3481_v46, %s3595_s30 }
 0xc25   :  { %v1766_v37 = vpop.permute.xlu1 %1765 }
 0xc26   :  { %v1776_v57 = vmul.f32 %v1766_v37, %v1756_v55  ;;  %v1764_v40 = vpop.permute.xlu0 %1763 }
 0xc27   :  { %v1775_v41 = vmul.f32 %v1764_v40, %v1755_v56 }
 0xc28   :  { %v4306_v47 = vadd.f32 %v1780_v60, %v1776_v57 }
 0xc29   :  { %v4308_v48 = vadd.f32 %v1779_v10, %v1775_v41  ;;  %v1770_v42 = vpop.permute.xlu1 %1769 }
 0xc2a   :  { %v1778_v18 = vmul.f32 %v1770_v42, %v1758_v62  ;;  %1798 = vrot.lane.b32.xlu1 %v4306_v47, %s3595_s30  ;;  %v1768_v49 = vpop.permute.xlu0 %1767 }
 0xc2b   :  { %v1777_v1 = vmul.f32 %v1768_v49, %v1757_v6  ;;  %1796 = vrot.lane.b32.xlu0 %v4308_v48, %s3595_s30 }
 0xc2c   :  { %v4316_v28 = vadd.f32 %v1782_v50, %v1778_v18 }
 0xc2d   :  { %v4318_v16 = vadd.f32 %v1781_v35, %v1777_v1 }
 0xc2e   :  { %1802 = vrot.lane.b32.xlu1 %v4316_v28, %s3595_s30 }
 0xc2f   :  { %1800 = vrot.lane.b32.xlu0 %v4318_v16, %s3595_s30 }
 0xc9c   :  { %v1799_v21 = vpop.permute.xlu1 %1798 }
 0xc9d   :  { %v1797_v5 = vpop.permute.xlu0 %1796 }
 0xc9e   :  { %3219 = vmatprep.mubr.msk.f32.mxu0 %vm167_vm3, %v1797_v5 }
 0xc9f   :  { %3220 = vmatmul.mubr.msk.f32.vlgmr.msra.gmra.mrb[22].mxu0 %vm167_vm3, %v1799_v21 }
 0xca0   :  { %3352 = vmatpush3.bf16.msra.mxu0 %v3886_v12  ;;  %v1803_v14 = vpop.permute.xlu1 %1802 }
 0xca1   :  { %v1801_v45 = vpop.permute.xlu0 %1800  ;;  %3354 = vmatprep.subr.bf16.mxu0 %v3898_v23 }
 0xca2   :  { %3222 = vmatprep.mubr.msk.f32.mxu0 %vm167_vm3, %v1801_v45 }
 0xca3   :  { %3223 = vmatmul.mubr.msk.f32.gmra.mrb[24].mxu0 %vm167_vm3, %v1803_v14 }
 0xca4   :  { %3356 = vmatpush3.bf16.msra.mxu0 %v3898_v23 }
 0xca5   :  { %3358 = vmatprep.subr.bf16.mxu0 %v3886_v12 }
 0xd72   :  { %v3221_v31 = vpop.f32.mrb[22].mxu0 }
 0xd73   :  { %v1902_v44 = vadd.f32 %v3221_v31, %v1898_v9  ;;  %v1934_v22 = vadd.f32 %v4339_v39, %v3221_v31  ;;  %v1878_v29 = vpop.f32.mrb[23].mxu0 }
 0xd74   :  { %v1901_v30 = vadd.f32 %v1897_v20, %v1878_v29  ;;  %v1933_v27 = vadd.f32 %v4339_v39, %v1878_v29 }
 0xd75   :  { %1943 = vrot.lane.b32.xlu1 %v1934_v22, %s3594_s11  ;;  %v2894_v15 = vmul.f32 -1.442695, %v1902_v44 }
 0xd76   :  { %1941 = vrot.lane.b32.xlu0 %v1933_v27, %s3594_s11  ;;  %v3224_v54 = vpop.f32.mrb[24].mxu0  ;;  %v2893_v33 = vmul.f32 -1.442695, %v1901_v30 }
 0xd77   :  { %v1904_v32 = vadd.f32 %v3224_v54, %v1900_v53  ;;  %v1936_v19 = vadd.f32 %v4339_v39, %v3224_v54  ;;  %v1888_v2 = vpop.f32.mrb[25].mxu0  ;;  %3482 = vpow2.f32 %v2894_v15 }
 0xd78   :  { %v1903_v26 = vadd.f32 %v1899_v13, %v1888_v2  ;;  %v1935_v3 = vadd.f32 %v4339_v39, %v1888_v2  ;;  %3484 = vpow2.f32 %v2893_v33 }
 0xd79   :  { %1947 = vrot.lane.b32.xlu1 %v1936_v19, %s3594_s11  ;;  %v2896_v58 = vmul.f32 -1.442695, %v1904_v32 }
 0xd7a   :  { %1945 = vrot.lane.b32.xlu0 %v1935_v3, %s3594_s11  ;;  %v2895_v51 = vmul.f32 -1.442695, %v1903_v26 }
 0xd7b   :  { %3486 = vpow2.f32 %v2896_v58 }
 0xd7c   :  { %3488 = vpow2.f32 %v2895_v51 }
 0xd81   :  { %v3483_v59 = vpop.eup %3482 }
 0xd82   :  { %v3485_v43 = vpop.eup %3484  ;;  %v1918_v34 = vadd.f32 1.0, %v3483_v59 }
 0xd83   :  { %v1917_v46 = vadd.f32 1.0, %v3485_v43 }
 0xd84   :  { %3490 = vrcp.f32 %v1918_v34 }
 0xd85   :  { %v3487_v52 = vpop.eup %3486  ;;  %3492 = vrcp.f32 %v1917_v46 }
 0xd86   :  { %v3489_v55 = vpop.eup %3488  ;;  %v1920_v37 = vadd.f32 1.0, %v3487_v52  ;;  %v3579_v52 = vld [vmem:[#allocation2 + $0xa8] sm:$0xff] }
 0xd87   :  { %v1919_v56 = vadd.f32 1.0, %v3489_v55  ;;  %v2124_v46 = vadd.f32 %v3579_v52, %v3967_v11 }
 0xd88   :  { %3494 = vrcp.f32 %v1920_v37  ;;  %v3580_v37 = vld [vmem:[#allocation2 + $0xa0] sm:$0xff] }
 0xd89   :  { %3496 = vrcp.f32 %v1919_v56  ;;  %v2123_v56 = vadd.f32 %v3580_v37, %v3981_v17 }
 0xd8e   :  { %v3491_v60 = vpop.eup %3490 }
 0xd8f   :  { %v3493_v40 = vpop.eup %3492  ;;  %v2006_v27 = vmul.f32 %v3491_v60, %v4306_v47 }
 0xd90   :  { %v2005_v54 = vmul.f32 %v3493_v40, %v4308_v48 }
 0xd92   :  { %v3495_v42 = vpop.eup %3494 }
 0xd93   :  { %v3497_v50 = vpop.eup %3496  ;;  %v1984_v19 = vsub.f32 1.0, %v3495_v42  ;;  %v2008_v15 = vmul.f32 %v3495_v42, %v4316_v28 }
 0xd94   :  { %v1983_v3 = vsub.f32 1.0, %v3497_v50  ;;  %v2007_v47 = vmul.f32 %v3497_v50, %v4318_v16 }
 0xde7   :  { %v1944_v57 = vpop.permute.xlu1 %1943 }
 0xde8   :  { %v1954_v10 = vmul.f32 %v3491_v60, %v1944_v57  ;;  %v1942_v41 = vpop.permute.xlu0 %1941 }
 0xde9   :  { %v1953_v62 = vmul.f32 %v3493_v40, %v1942_v41 }
 0xdea   :  { %1963 = vrot.lane.b32.xlu1 %v1954_v10, %s3594_s11 }
 0xdeb   :  { %v1948_v6 = vpop.permute.xlu1 %1947  ;;  %1961 = vrot.lane.b32.xlu0 %v1953_v62, %s3594_s11  ;;  %v3581_v62 = vld [vmem:[#allocation2 + $0xb8] sm:$0xff] }
 0xdec   :  { %v1956_v18 = vmul.f32 %v3495_v42, %v1948_v6  ;;  %v1946_v49 = vpop.permute.xlu0 %1945  ;;  %v2126_v42 = vadd.f32 %v3581_v62, %v3967_v11 }
 0xded   :  { %v1955_v35 = vmul.f32 %v3497_v50, %v1946_v49  ;;  %v3582_v50 = vld [vmem:[#allocation2 + $0xb0] sm:$0xff] }
 0xdee   :  { %1967 = vrot.lane.b32.xlu1 %v1956_v18, %s3594_s11  ;;  %v2125_v18 = vadd.f32 %v3582_v50, %v3981_v17 }
 0xdef   :  { %1965 = vrot.lane.b32.xlu0 %v1955_v35, %s3594_s11 }
 0xe5c   :  { %v1964_v1 = vpop.permute.xlu1 %1963 }
 0xe5d   :  { %v1974_v21 = vadd.f32 %v1964_v1, %v4076_v63  ;;  %v1962_v5 = vpop.permute.xlu0 %1961 }
 0xe5e   :  { %v1973_v45 = vadd.f32 %v1962_v5, %v4080_v0  ;;  %v1982_v0 = vsub.f32 1.0, %v3491_v60 }
 0xe5f   :  { %3498 = vtanh.f32 %v1974_v21 }
 0xe60   :  { %3500 = vtanh.f32 %v1973_v45  ;;  %v1968_v14 = vpop.permute.xlu1 %1967 }
 0xe61   :  { %v1976_v9 = vadd.f32 %v1968_v14, %v4084_v4  ;;  %v1966_v31 = vpop.permute.xlu0 %1965  ;;  %v1981_v4 = vsub.f32 1.0, %v3493_v40 }
 0xe62   :  { %v1975_v20 = vadd.f32 %v1966_v31, %v4088_v7 }
 0xe63   :  { %3502 = vtanh.f32 %v1976_v9 }
 0xe64   :  { %3504 = vtanh.f32 %v1975_v20 }
 0xe69   :  { %v3499_v44 = vpop.eup %3498 }
 0xe6a   :  { %v3501_v22 = vpop.eup %3500  ;;  %1991 = vrot.lane.b32.xlu1 %v3499_v44, %s3595_s30 }
 0xe6b   :  { %1989 = vrot.lane.b32.xlu0 %v3501_v22, %s3595_s30 }
 0xe6d   :  { %v3503_v63 = vpop.eup %3502 }
 0xe6e   :  { %v3505_v29 = vpop.eup %3504  ;;  %1995 = vrot.lane.b32.xlu1 %v3503_v63, %s3595_s30 }
 0xe6f   :  { %1993 = vrot.lane.b32.xlu0 %v3505_v29, %s3595_s30 }
 0xedc   :  { %v1992_v30 = vpop.permute.xlu1 %1991 }
 0xedd   :  { %v2002_v7 = vmul.f32 %v1992_v30, %v1982_v0  ;;  %v1990_v53 = vpop.permute.xlu0 %1989 }
 0xede   :  { %v2001_v13 = vmul.f32 %v1990_v53, %v1981_v4 }
 0xedf   :  { %v4367_v32 = vadd.f32 %v2006_v27, %v2002_v7 }
 0xee0   :  { %v4369_v2 = vadd.f32 %v2005_v54, %v2001_v13  ;;  %v1996_v26 = vpop.permute.xlu1 %1995 }
 0xee1   :  { %v2004_v33 = vmul.f32 %v1996_v26, %v1984_v19  ;;  %2024 = vrot.lane.b32.xlu1 %v4367_v32, %s3595_s30  ;;  %v1994_v58 = vpop.permute.xlu0 %1993 }
 0xee2   :  { %v2003_v51 = vmul.f32 %v1994_v58, %v1983_v3  ;;  %2022 = vrot.lane.b32.xlu0 %v4369_v2, %s3595_s30 }
 0xee3   :  { %v4377_v48 = vadd.f32 %v2008_v15, %v2004_v33 }
 0xee4   :  { %v4379_v59 = vadd.f32 %v2007_v47, %v2003_v51 }
 0xee5   :  { %2028 = vrot.lane.b32.xlu1 %v4377_v48, %s3595_s30 }
 0xee6   :  { %2026 = vrot.lane.b32.xlu0 %v4379_v59, %s3595_s30 }
 0xf53   :  { %v2025_v28 = vpop.permute.xlu1 %2024 }
 0xf54   :  { %v2023_v43 = vpop.permute.xlu0 %2022 }
 0xf55   :  { %3233 = vmatprep.mubr.msk.f32.mxu0 %vm167_vm3, %v2023_v43 }
 0xf56   :  { %3234 = vmatmul.mubr.msk.f32.vlgmr.msra.gmra.mrb[26].mxu0 %vm167_vm3, %v2025_v28 }
 0xf57   :  { %3360 = vmatpush3.bf16.msra.mxu0 %v3886_v12  ;;  %v2029_v34 = vpop.permute.xlu1 %2028 }
 0xf58   :  { %v2027_v16 = vpop.permute.xlu0 %2026  ;;  %3362 = vmatprep.subr.bf16.mxu0 %v3898_v23 }
 0xf59   :  { %3236 = vmatprep.mubr.msk.f32.mxu0 %vm167_vm3, %v2027_v16  ;;  %v4577_v16 = vld [vmem:[#allocation3_spill] sm:$0xff] }
 0xf5a   :  { %3237 = vmatmul.mubr.msk.f32.gmra.mrb[28].mxu0 %vm167_vm3, %v2029_v34 }
 0xf5b   :  { %3364 = vmatpush3.bf16.msra.mxu0 %v3898_v23 }
 0xf5c   :  { %3366 = vmatprep.subr.bf16.mxu0 %v3886_v12 }
0x1029   :  { %v3235_v55 = vpop.f32.mrb[26].mxu0 }
0x102a   :  { %v2128_v60 = vadd.f32 %v3235_v55, %v2124_v46  ;;  %v2160_v57 = vadd.f32 %v4339_v39, %v3235_v55  ;;  %v2104_v40 = vpop.f32.mrb[27].mxu0 }
0x102b   :  { %v2127_v10 = vadd.f32 %v2123_v56, %v2104_v40  ;;  %v2159_v41 = vadd.f32 %v4339_v39, %v2104_v40 }
0x102c   :  { %2169 = vrot.lane.b32.xlu1 %v2160_v57, %s3594_s11  ;;  %v2902_v45 = vmul.f32 -1.442695, %v2128_v60 }
0x102d   :  { %2167 = vrot.lane.b32.xlu0 %v2159_v41, %s3594_s11  ;;  %v3238_v6 = vpop.f32.mrb[28].mxu0  ;;  %v2901_v14 = vmul.f32 -1.442695, %v2127_v10 }
0x102e   :  { %v2130_v49 = vadd.f32 %v3238_v6, %v2126_v42  ;;  %v2162_v35 = vadd.f32 %v4339_v39, %v3238_v6  ;;  %v2114_v1 = vpop.f32.mrb[29].mxu0  ;;  %3506 = vpow2.f32 %v2902_v45 }
0x102f   :  { %v2129_v21 = vadd.f32 %v2125_v18, %v2114_v1  ;;  %v2161_v5 = vadd.f32 %v4339_v39, %v2114_v1  ;;  %3508 = vpow2.f32 %v2901_v14 }
0x1030   :  { %2173 = vrot.lane.b32.xlu1 %v2162_v35, %s3594_s11  ;;  %v2904_v9 = vmul.f32 -1.442695, %v2130_v49 }
0x1031   :  { %2171 = vrot.lane.b32.xlu0 %v2161_v5, %s3594_s11  ;;  %v2903_v31 = vmul.f32 -1.442695, %v2129_v21 }
0x1032   :  { %3510 = vpow2.f32 %v2904_v9 }
0x1033   :  { %3512 = vpow2.f32 %v2903_v31 }
0x1038   :  { %v3507_v20 = vpop.eup %3506 }
0x1039   :  { %v3509_v44 = vpop.eup %3508  ;;  %v2144_v22 = vadd.f32 1.0, %v3507_v20 }
0x103a   :  { %v2143_v29 = vadd.f32 1.0, %v3509_v44  ;;  %v3583_v44 = vld [vmem:[#allocation2 + $0xc8] sm:$0xff] }
0x103b   :  { %3514 = vrcp.f32 %v2144_v22  ;;  %v2350_v22 = vadd.f32 %v3583_v44, %v3967_v11 }
0x103c   :  { %v3511_v63 = vpop.eup %3510  ;;  %3516 = vrcp.f32 %v2143_v29  ;;  %v3584_v29 = vld [vmem:[#allocation2 + $0xc0] sm:$0xff] }
0x103d   :  { %v3513_v0 = vpop.eup %3512  ;;  %v2146_v30 = vadd.f32 1.0, %v3511_v63 }
0x103e   :  { %v2145_v4 = vadd.f32 1.0, %v3513_v0  ;;  %v2349_v0 = vadd.f32 %v3584_v29, %v3981_v17 }
0x103f   :  { %3518 = vrcp.f32 %v2146_v30 }
0x1040   :  { %3520 = vrcp.f32 %v2145_v4 }
0x1045   :  { %v3515_v27 = vpop.eup %3514 }
0x1046   :  { %v3517_v53 = vpop.eup %3516  ;;  %v2208_v40 = vsub.f32 1.0, %v3515_v27  ;;  %v2232_v41 = vmul.f32 %v3515_v27, %v4367_v32 }
0x1047   :  { %v2231_v42 = vmul.f32 %v3517_v53, %v4369_v2 }
0x1049   :  { %v3519_v26 = vpop.eup %3518 }
0x104a   :  { %v3521_v15 = vpop.eup %3520  ;;  %v2210_v18 = vsub.f32 1.0, %v3519_v26  ;;  %v2234_v21 = vmul.f32 %v3519_v26, %v4377_v48 }
0x104b   :  { %v2209_v1 = vsub.f32 1.0, %v3521_v15  ;;  %v2233_v32 = vmul.f32 %v3521_v15, %v4379_v59 }
0x109e   :  { %v2170_v7 = vpop.permute.xlu1 %2169 }
0x109f   :  { %v2180_v54 = vmul.f32 %v3515_v27, %v2170_v7  ;;  %v2168_v13 = vpop.permute.xlu0 %2167 }
0x10a0   :  { %v2179_v19 = vmul.f32 %v3517_v53, %v2168_v13  ;;  %v3586_v13 = vld [vmem:[#allocation2 + $0xd0] sm:$0xff] }
0x10a1   :  { %2189 = vrot.lane.b32.xlu1 %v2180_v54, %s3594_s11 }
0x10a2   :  { %v2174_v3 = vpop.permute.xlu1 %2173  ;;  %2187 = vrot.lane.b32.xlu0 %v2179_v19, %s3594_s11  ;;  %v2351_v19 = vadd.f32 %v3586_v13, %v3981_v17 }
0x10a3   :  { %v2182_v33 = vmul.f32 %v3519_v26, %v2174_v3  ;;  %v2172_v58 = vpop.permute.xlu0 %2171 }
0x10a4   :  { %v2181_v47 = vmul.f32 %v3521_v15, %v2172_v58 }
0x10a5   :  { %2193 = vrot.lane.b32.xlu1 %v2182_v33, %s3594_s11 }
0x10a6   :  { %2191 = vrot.lane.b32.xlu0 %v2181_v47, %s3594_s11 }
0x1113   :  { %v2190_v51 = vpop.permute.xlu1 %2189 }
0x1114   :  { %v2200_v28 = vadd.f32 %v2190_v51, %v4092_v25  ;;  %v2188_v43 = vpop.permute.xlu0 %2187 }
0x1115   :  { %v2199_v34 = vadd.f32 %v2188_v43, %v4577_v16 }
0x1116   :  { %3522 = vtanh.f32 %v2200_v28 }
0x1117   :  { %3524 = vtanh.f32 %v2199_v34  ;;  %v2194_v52 = vpop.permute.xlu1 %2193 }
0x1118   :  { %v2202_v46 = vadd.f32 %v2194_v52, %v4098_v36  ;;  %v2192_v55 = vpop.permute.xlu0 %2191  ;;  %v2207_v36 = vsub.f32 1.0, %v3517_v53  ;;  %v3585_v53 = vld [vmem:[#allocation2 + $0xd8] sm:$0xff] }
0x1119   :  { %v2201_v37 = vadd.f32 %v2192_v55, %v4101_v38  ;;  %v2352_v54 = vadd.f32 %v3585_v53, %v3967_v11 }
0x111a   :  { %3526 = vtanh.f32 %v2202_v46 }
0x111b   :  { %3528 = vtanh.f32 %v2201_v37 }
0x1120   :  { %v3523_v56 = vpop.eup %3522 }
0x1121   :  { %v3525_v60 = vpop.eup %3524  ;;  %2217 = vrot.lane.b32.xlu1 %v3523_v56, %s3595_s30 }
0x1122   :  { %2215 = vrot.lane.b32.xlu0 %v3525_v60, %s3595_s30 }
0x1124   :  { %v3527_v25 = vpop.eup %3526 }
0x1125   :  { %v3529_v57 = vpop.eup %3528  ;;  %2221 = vrot.lane.b32.xlu1 %v3527_v25, %s3595_s30 }
0x1126   :  { %2219 = vrot.lane.b32.xlu0 %v3529_v57, %s3595_s30 }
0x1193   :  { %v2218_v10 = vpop.permute.xlu1 %2217 }
0x1194   :  { %v2228_v38 = vmul.f32 %v2218_v10, %v2208_v40  ;;  %v2216_v62 = vpop.permute.xlu0 %2215 }
0x1195   :  { %v2227_v6 = vmul.f32 %v2216_v62, %v2207_v36 }
0x1196   :  { %v4419_v50 = vadd.f32 %v2232_v41, %v2228_v38 }
0x1197   :  { %v4421_v49 = vadd.f32 %v2231_v42, %v2227_v6  ;;  %v2222_v35 = vpop.permute.xlu1 %2221 }
0x1198   :  { %v2230_v5 = vmul.f32 %v2222_v35, %v2210_v18  ;;  %2250 = vrot.lane.b32.xlu1 %v4419_v50, %s3595_s30  ;;  %v2220_v45 = vpop.permute.xlu0 %2219 }
0x1199   :  { %v2229_v14 = vmul.f32 %v2220_v45, %v2209_v1  ;;  %2248 = vrot.lane.b32.xlu0 %v4421_v49, %s3595_s30 }
0x119a   :  { %v4429_v2 = vadd.f32 %v2234_v21, %v2230_v5  ;;  %v4578_v21 = vld [vmem:[#allocation4_spill] sm:$0xff] }
0x119b   :  { %v4431_v9 = vadd.f32 %v2233_v32, %v2229_v14  ;;  %v4579_v32 = vld [vmem:[#allocation5_spill] sm:$0xff] }
0x119c   :  { %2254 = vrot.lane.b32.xlu1 %v4429_v2, %s3595_s30 }
0x119d   :  { %2252 = vrot.lane.b32.xlu0 %v4431_v9, %s3595_s30 }
0x120a   :  { %v2251_v48 = vpop.permute.xlu1 %2250 }
0x120b   :  { %v2249_v31 = vpop.permute.xlu0 %2248 }
0x120c   :  { %3247 = vmatprep.mubr.msk.f32.mxu0 %vm167_vm3, %v2249_v31 }
0x120d   :  { %3248 = vmatmul.mubr.msk.f32.vlgmr.msra.gmra.mrb[30].mxu0 %vm167_vm3, %v2251_v48 }
0x120e   :  { %3368 = vmatpush3.bf16.msra.mxu0 %v3886_v12  ;;  %v2255_v20 = vpop.permute.xlu1 %2254 }
0x120f   :  { %v2253_v59 = vpop.permute.xlu0 %2252  ;;  %3370 = vmatprep.subr.bf16.mxu0 %v3898_v23 }
0x1210   :  { %3250 = vmatprep.mubr.msk.f32.mxu0 %vm167_vm3, %v2253_v59 }
0x1211   :  { %3251 = vmatmul.mubr.msk.f32.gmra.mrb[32].mxu0 %vm167_vm3, %v2255_v20  ;;  %v4580_v20 = vld [vmem:[#allocation6_spill] sm:$0xff] }
0x1212   :  { %3372 = vmatpush3.bf16.msra.mxu0 %v3898_v23 }
0x12e0   :  { %v3249_v63 = vpop.f32.mrb[30].mxu0 }
0x12e1   :  { %v2354_v30 = vadd.f32 %v3249_v63, %v2350_v22  ;;  %v2386_v12 = vadd.f32 %v4339_v39, %v3249_v63  ;;  %v2330_v4 = vpop.f32.mrb[31].mxu0 }
0x12e2   :  { %v2353_v27 = vadd.f32 %v2349_v0, %v2330_v4  ;;  %v2385_v7 = vadd.f32 %v4339_v39, %v2330_v4 }
0x12e3   :  { %2395 = vrot.lane.b32.xlu1 %v2386_v12, %s3594_s11  ;;  %v2910_v47 = vmul.f32 -1.442695, %v2354_v30 }
0x12e4   :  { %2393 = vrot.lane.b32.xlu0 %v2385_v7, %s3594_s11  ;;  %v3252_v23 = vpop.f32.mrb[32].mxu0  ;;  %v2909_v51 = vmul.f32 -1.442695, %v2353_v27 }
0x12e5   :  { %v2356_v26 = vadd.f32 %v3252_v23, %v2352_v54  ;;  %v2388_v3 = vadd.f32 %v4339_v39, %v3252_v23  ;;  %v2340_v15 = vpop.f32.mrb[33].mxu0  ;;  %3530 = vpow2.f32 %v2910_v47 }
0x12e6   :  { %v2355_v33 = vadd.f32 %v2351_v19, %v2340_v15  ;;  %v2387_v58 = vadd.f32 %v4339_v39, %v2340_v15  ;;  %3532 = vpow2.f32 %v2909_v51 }
0x12e7   :  { %2399 = vrot.lane.b32.xlu1 %v2388_v3, %s3594_s11  ;;  %v2912_v28 = vmul.f32 -1.442695, %v2356_v26 }
0x12e8   :  { %2397 = vrot.lane.b32.xlu0 %v2387_v58, %s3594_s11  ;;  %v2911_v43 = vmul.f32 -1.442695, %v2355_v33 }
0x12e9   :  { %3534 = vpow2.f32 %v2912_v28 }
0x12ea   :  { %3536 = vpow2.f32 %v2911_v43 }
0x12ef   :  { %v3531_v16 = vpop.eup %3530 }
0x12f0   :  { %v3533_v34 = vpop.eup %3532  ;;  %v2370_v52 = vadd.f32 1.0, %v3531_v16  ;;  %v3587_v16 = vld [vmem:[#allocation2 + $0xe8] sm:$0xff] }
0x12f1   :  { %v2369_v55 = vadd.f32 1.0, %v3533_v34  ;;  %v2576_v34 = vadd.f32 %v3587_v16, %v3967_v11 }
0x12f2   :  { %3538 = vrcp.f32 %v2370_v52 }
0x12f3   :  { %v3535_v46 = vpop.eup %3534  ;;  %3540 = vrcp.f32 %v2369_v55 }
0x12f4   :  { %v3537_v37 = vpop.eup %3536  ;;  %v2372_v56 = vadd.f32 1.0, %v3535_v46  ;;  %v3588_v46 = vld [vmem:[#allocation2 + $0xe0] sm:$0xff] }
0x12f5   :  { %v2371_v60 = vadd.f32 1.0, %v3537_v37  ;;  %v2575_v55 = vadd.f32 %v3588_v46, %v3981_v17 }
0x12f6   :  { %3542 = vrcp.f32 %v2372_v56 }
0x12f7   :  { %3544 = vrcp.f32 %v2371_v60 }
0x12fc   :  { %v3539_v25 = vpop.eup %3538 }
0x12fd   :  { %v3541_v40 = vpop.eup %3540  ;;  %v2434_v30 = vsub.f32 1.0, %v3539_v25  ;;  %v2458_v4 = vmul.f32 %v3539_v25, %v4419_v50 }
0x12fe   :  { %v2457_v53 = vmul.f32 %v3541_v40, %v4421_v49 }
0x1300   :  { %v3543_v38 = vpop.eup %3542 }
0x1301   :  { %v3545_v42 = vpop.eup %3544  ;;  %v2436_v13 = vsub.f32 1.0, %v3543_v38  ;;  %v2460_v15 = vmul.f32 %v3543_v38, %v4429_v2 }
0x1302   :  { %v2435_v3 = vsub.f32 1.0, %v3545_v42  ;;  %v2459_v50 = vmul.f32 %v3545_v42, %v4431_v9 }
0x1355   :  { %v2396_v57 = vpop.permute.xlu1 %2395 }
0x1356   :  { %v2406_v10 = vmul.f32 %v3539_v25, %v2396_v57  ;;  %v2394_v36 = vpop.permute.xlu0 %2393 }
0x1357   :  { %v2405_v41 = vmul.f32 %v3541_v40, %v2394_v36 }
0x1358   :  { %2415 = vrot.lane.b32.xlu1 %v2406_v10, %s3594_s11 }
0x1359   :  { %v2400_v62 = vpop.permute.xlu1 %2399  ;;  %2413 = vrot.lane.b32.xlu0 %v2405_v41, %s3594_s11  ;;  %v3590_v41 = vld [vmem:[#allocation2 + $0xf0] sm:$0xff] }
0x135a   :  { %v2408_v6 = vmul.f32 %v3543_v38, %v2400_v62  ;;  %v2398_v18 = vpop.permute.xlu0 %2397  ;;  %v2577_v38 = vadd.f32 %v3590_v41, %v3981_v17 }
0x135b   :  { %v2407_v35 = vmul.f32 %v3545_v42, %v2398_v18 }
0x135c   :  { %2419 = vrot.lane.b32.xlu1 %v2408_v6, %s3594_s11 }
0x135d   :  { %2417 = vrot.lane.b32.xlu0 %v2407_v35, %s3594_s11 }
0x13ca   :  { %v2416_v1 = vpop.permute.xlu1 %2415 }
0x13cb   :  { %v2426_v5 = vadd.f32 %v2416_v1, %v4578_v21  ;;  %v2414_v45 = vpop.permute.xlu0 %2413 }
0x13cc   :  { %v2425_v14 = vadd.f32 %v2414_v45, %v4579_v32 }
0x13cd   :  { %3546 = vtanh.f32 %v2426_v5 }
0x13ce   :  { %3548 = vtanh.f32 %v2425_v14  ;;  %v2420_v48 = vpop.permute.xlu1 %2419 }
0x13cf   :  { %v2428_v31 = vadd.f32 %v2420_v48, %v4110_v61  ;;  %v2418_v59 = vpop.permute.xlu0 %2417  ;;  %v2433_v61 = vsub.f32 1.0, %v3541_v40  ;;  %v3589_v40 = vld [vmem:[#allocation2 + $0xf8] sm:$0xff] }
0x13d0   :  { %v2427_v44 = vadd.f32 %v2418_v59, %v4580_v20  ;;  %v2578_v10 = vadd.f32 %v3589_v40, %v3967_v11 }
0x13d1   :  { %3550 = vtanh.f32 %v2428_v31 }
0x13d2   :  { %3552 = vtanh.f32 %v2427_v44 }
0x13d7   :  { %v3547_v22 = vpop.eup %3546 }
0x13d8   :  { %v3549_v63 = vpop.eup %3548  ;;  %2443 = vrot.lane.b32.xlu1 %v3547_v22, %s3595_s30 }
0x13d9   :  { %2441 = vrot.lane.b32.xlu0 %v3549_v63, %s3595_s30 }
0x13db   :  { %v3551_v29 = vpop.eup %3550 }
0x13dc   :  { %v3553_v0 = vpop.eup %3552  ;;  %2447 = vrot.lane.b32.xlu1 %v3551_v29, %s3595_s30 }
0x13dd   :  { %2445 = vrot.lane.b32.xlu0 %v3553_v0, %s3595_s30 }
0x144a   :  { %v2444_v12 = vpop.permute.xlu1 %2443 }
0x144b   :  { %v2454_v27 = vmul.f32 %v2444_v12, %v2434_v30  ;;  %v2442_v7 = vpop.permute.xlu0 %2441 }
0x144c   :  { %v2453_v54 = vmul.f32 %v2442_v7, %v2433_v61 }
0x144d   :  { %v4470_v23 = vadd.f32 %v2458_v4, %v2454_v27 }
0x144e   :  { %v4472_v19 = vadd.f32 %v2457_v53, %v2453_v54  ;;  %v2448_v26 = vpop.permute.xlu1 %2447  ;;  %v4581_v54 = vld [vmem:[#allocation7_spill] sm:$0xff] }
0x144f   :  { %v2456_v33 = vmul.f32 %v2448_v26, %v2436_v13  ;;  %2476 = vrot.lane.b32.xlu1 %v4470_v23, %s3595_s30  ;;  %v2446_v58 = vpop.permute.xlu0 %2445 }
0x1450   :  { %v2455_v47 = vmul.f32 %v2446_v58, %v2435_v3  ;;  %2474 = vrot.lane.b32.xlu0 %v4472_v19, %s3595_s30  ;;  %v4582_v3 = vld [vmem:[#allocation8_spill] sm:$0xff] }
0x1451   :  { %v4480_v49 = vadd.f32 %v2460_v15, %v2456_v33 }
0x1452   :  { %v4482_v51 = vadd.f32 %v2459_v50, %v2455_v47 }
0x1453   :  { %2480 = vrot.lane.b32.xlu1 %v4480_v49, %s3595_s30 }
0x1454   :  { %2478 = vrot.lane.b32.xlu0 %v4482_v51, %s3595_s30 }
0x14c1   :  { %v2477_v2 = vpop.permute.xlu1 %2476 }
0x14c2   :  { %v2475_v28 = vpop.permute.xlu0 %2474 }
0x14c3   :  { %3261 = vmatprep.mubr.msk.f32.mxu0 %vm167_vm3, %v2475_v28  ;;  %v2692_v28 = vld [vmem:[%s4568_s13 + $0x8] sm:$0xff] }
0x14c4   :  { %3262 = vmatmul.mubr.msk.f32.vlgmr.msra.gmra.mrb[34].mxu0 %vm167_vm3, %v2477_v2  ;;  %v2691_v2 = vld [vmem:[%s4568_s13] sm:$0xff] }
0x14c5   :  { %v2481_v43 = vpop.permute.xlu1 %2480 }
0x14c6   :  { %v2479_v9 = vpop.permute.xlu0 %2478 }
0x14c7   :  { %3264 = vmatprep.mubr.msk.f32.mxu0 %vm167_vm3, %v2479_v9  ;;  %v2693_v9 = vld [vmem:[%s4568_s13 + $0x10] sm:$0xff] }
0x14c8   :  { %3265 = vmatmul.mubr.msk.f32.gmra.mrb[36].mxu0 %vm167_vm3, %v2481_v43  ;;  %v3373_v43 = vpack.c.bf16 %v2692_v28, %v2691_v2 }
0x14ca   :  { %3374 = vmatprep.subr.bf16.mxu1 %v3373_v43 }
0x14cb   :  { %3376 = vmatpush3.bf16.msra.mxu1 %v3373_v43 }
0x1597   :  { %v3263_v52 = vpop.f32.mrb[34].mxu0 }
0x1598   :  { %v2580_v37 = vadd.f32 %v3263_v52, %v2576_v34  ;;  %v2612_v56 = vadd.f32 %v4339_v39, %v3263_v52  ;;  %v2556_v60 = vpop.f32.mrb[35].mxu0 }
0x1599   :  { %v2579_v25 = vadd.f32 %v2575_v55, %v2556_v60  ;;  %v2611_v57 = vadd.f32 %v4339_v39, %v2556_v60 }
0x159a   :  { %2621 = vrot.lane.b32.xlu1 %v2612_v56, %s3594_s11  ;;  %v2918_v1 = vmul.f32 -1.442695, %v2580_v37 }
0x159b   :  { %2619 = vrot.lane.b32.xlu0 %v2611_v57, %s3594_s11  ;;  %v3266_v36 = vpop.f32.mrb[36].mxu0  ;;  %v2917_v21 = vmul.f32 -1.442695, %v2579_v25 }
0x159c   :  { %v2582_v62 = vadd.f32 %v3266_v36, %v2578_v10  ;;  %v2614_v42 = vadd.f32 %v4339_v39, %v3266_v36  ;;  %v2566_v6 = vpop.f32.mrb[37].mxu0  ;;  %3554 = vpow2.f32 %v2918_v1 }
0x159d   :  { %v2581_v18 = vadd.f32 %v2577_v38, %v2566_v6  ;;  %v2613_v35 = vadd.f32 %v4339_v39, %v2566_v6  ;;  %3556 = vpow2.f32 %v2917_v21 }
0x159e   :  { %2625 = vrot.lane.b32.xlu1 %v2614_v42, %s3594_s11  ;;  %v2920_v11 = vmul.f32 -1.442695, %v2582_v62 }
0x159f   :  { %2623 = vrot.lane.b32.xlu0 %v2613_v35, %s3594_s11  ;;  %v2919_v5 = vmul.f32 -1.442695, %v2581_v18 }
0x15a0   :  { %3558 = vpow2.f32 %v2920_v11 }
0x15a1   :  { %3560 = vpow2.f32 %v2919_v5 }
0x15a6   :  { %v3555_v17 = vpop.eup %3554 }
0x15a7   :  { %v3557_v45 = vpop.eup %3556  ;;  %v2596_v32 = vadd.f32 1.0, %v3555_v17 }
0x15a8   :  { %v2595_v48 = vadd.f32 1.0, %v3557_v45 }
0x15a9   :  { %3562 = vrcp.f32 %v2596_v32 }
0x15aa   :  { %v3559_v14 = vpop.eup %3558  ;;  %3564 = vrcp.f32 %v2595_v48 }
0x15ab   :  { %v3561_v31 = vpop.eup %3560  ;;  %v2598_v39 = vadd.f32 1.0, %v3559_v14 }
0x15ac   :  { %v2597_v59 = vadd.f32 1.0, %v3561_v31 }
0x15ad   :  { %3566 = vrcp.f32 %v2598_v39 }
0x15ae   :  { %3568 = vrcp.f32 %v2597_v59 }
0x15b3   :  { %v3563_v20 = vpop.eup %3562 }
0x15b4   :  { %v3565_v22 = vpop.eup %3564  ;;  %v2660_v55 = vsub.f32 1.0, %v3563_v20  ;;  %v2684_v60 = vmul.f32 %v3563_v20, %v4470_v23 }
0x15b5   :  { %v2659_v56 = vsub.f32 1.0, %v3565_v22  ;;  %v2683_v40 = vmul.f32 %v3565_v22, %v4472_v19 }
0x15b7   :  { %v3567_v30 = vpop.eup %3566 }
0x15b8   :  { %v3569_v61 = vpop.eup %3568  ;;  %v2662_v41 = vsub.f32 1.0, %v3567_v30  ;;  %v2686_v6 = vmul.f32 %v3567_v30, %v4480_v49 }
0x15b9   :  { %v2661_v42 = vsub.f32 1.0, %v3569_v61  ;;  %v2685_v1 = vmul.f32 %v3569_v61, %v4482_v51  ;;  %v2921_v51 = vld [vmem:[%s4569_s14] ss:$0 sm:$0xff] }
0x160c   :  { %v2622_v44 = vpop.permute.xlu1 %2621 }
0x160d   :  { %v2632_v63 = vmul.f32 %v3563_v20, %v2622_v44  ;;  %v2620_v29 = vpop.permute.xlu0 %2619 }
0x160e   :  { %v2631_v0 = vmul.f32 %v3565_v22, %v2620_v29 }
0x160f   :  { %2641 = vrot.lane.b32.xlu1 %v2632_v63, %s3594_s11 }
0x1610   :  { %v2626_v12 = vpop.permute.xlu1 %2625  ;;  %2639 = vrot.lane.b32.xlu0 %v2631_v0, %s3594_s11 }
0x1611   :  { %v2634_v4 = vmul.f32 %v3567_v30, %v2626_v12  ;;  %v2624_v27 = vpop.permute.xlu0 %2623 }
0x1612   :  { %v2633_v7 = vmul.f32 %v3569_v61, %v2624_v27 }
0x1613   :  { %2645 = vrot.lane.b32.xlu1 %v2634_v4, %s3594_s11 }
0x1614   :  { %2643 = vrot.lane.b32.xlu0 %v2633_v7, %s3594_s11 }
0x1681   :  { %v2642_v53 = vpop.permute.xlu1 %2641 }
0x1682   :  { %v2652_v13 = vadd.f32 %v2642_v53, %v4581_v54  ;;  %v2640_v26 = vpop.permute.xlu0 %2639 }
0x1683   :  { %v2651_v15 = vadd.f32 %v2640_v26, %v4582_v3 }
0x1684   :  { %3570 = vtanh.f32 %v2652_v13 }
0x1685   :  { %3572 = vtanh.f32 %v2651_v15  ;;  %v2646_v33 = vpop.permute.xlu1 %2645 }
0x1686   :  { %v2654_v58 = vadd.f32 %v2646_v33, %v4122_v8  ;;  %v2644_v50 = vpop.permute.xlu0 %2643  ;;  %v2694_v8 = vld [vmem:[%s4568_s13 + $0x18] sm:$0xff] }
0x1687   :  { %v2653_v47 = vadd.f32 %v2644_v50, %v4125_v24  ;;  %v3377_v16 = vpack.c.bf16 %v2694_v8, %v2693_v9 }
0x1688   :  { %3574 = vtanh.f32 %v2654_v58 }
0x1689   :  { %3576 = vtanh.f32 %v2653_v47  ;;  %3378 = vmatprep.subr.bf16.mxu1 %v3377_v16 }
0x168a   :  { %3380 = vmatpush3.bf16.msra.mxu1 %v3377_v16 }
0x168e   :  { %v3571_v24 = vpop.eup %3570 }
0x168f   :  { %v3573_v34 = vpop.eup %3572  ;;  %2669 = vrot.lane.b32.xlu1 %v3571_v24, %s3595_s30 }
0x1690   :  { %2667 = vrot.lane.b32.xlu0 %v3573_v34, %s3595_s30 }
0x1692   :  { %v3575_v52 = vpop.eup %3574 }
0x1693   :  { %v3577_v46 = vpop.eup %3576  ;;  %2673 = vrot.lane.b32.xlu1 %v3575_v52, %s3595_s30 }
0x1694   :  { %2671 = vrot.lane.b32.xlu0 %v3577_v46, %s3595_s30 }
0x1701   :  { %v2670_v37 = vpop.permute.xlu1 %2669 }
0x1702   :  { %v2680_v25 = vmul.f32 %v2670_v37, %v2660_v55  ;;  %v2668_v57 = vpop.permute.xlu0 %2667 }
0x1703   :  { %v2679_v10 = vmul.f32 %v2668_v57, %v2659_v56 }
0x1704   :  { %v2688_v36 = vadd.f32 %v2684_v60, %v2680_v25 }
0x1705   :  { %v2687_v38 = vadd.f32 %v2683_v40, %v2679_v10  ;;  %v2674_v62 = vpop.permute.xlu1 %2673 }
0x1706   :  { %v2682_v18 = vmul.f32 %v2674_v62, %v2662_v41  ;;  %2708 = vrot.lane.b32.xlu1 %v2688_v36, %s3595_s30  ;;  %v2672_v35 = vpop.permute.xlu0 %2671 }
0x1707   :  { %v2681_v21 = vmul.f32 %v2672_v35, %v2661_v42  ;;  %2706 = vrot.lane.b32.xlu0 %v2687_v38, %s3595_s30 }
0x1708   :  { %v2690_v23 = vadd.f32 %v2686_v6, %v2682_v18 }
0x1709   :  { %v2689_v11 = vadd.f32 %v2685_v1, %v2681_v21 }
0x170a   :  { %2712 = vrot.lane.b32.xlu1 %v2690_v23, %s3595_s30 }
0x170b   :  { %2710 = vrot.lane.b32.xlu0 %v2689_v11, %s3595_s30 }
0x1778   :  { %v2709_v19 = vpop.permute.xlu1 %2708 }
0x1779   :  { %v2707_v5 = vpop.permute.xlu0 %2706 }
0x177a   :  { %3275 = vmatprep.mubr.msk.f32.mxu1 %vm167_vm3, %v2707_v5 }
0x177b   :  { %3276 = vmatmul.mubr.msk.f32.vlgmr.msra.gmra.mrb[36].mxu1 %vm167_vm3, %v2709_v19 }
0x177c   :  { %v2713_v17 = vpop.permute.xlu1 %2712 }
0x177d   :  { %v2711_v49 = vpop.permute.xlu0 %2710 }
0x177e   :  { %3278 = vmatprep.mubr.msk.f32.mxu1 %vm167_vm3, %v2711_v49 }
0x177f   :  { %3279 = vmatmul.mubr.msk.f32.gmra.mrb[38].mxu1 %vm167_vm3, %v2713_v17 }
0x184e   :  { %v3277_v45 = vpop.f32.mrb[36].mxu1 }
0x184f   :  { %v2794_v32 = vadd.f32 %v3277_v45, %v2921_v51  ;;  %v2788_v14 = vpop.f32.mrb[37].mxu1 }
0x1850   :  { %v2789_v48 = vadd.f32 %v2921_v51, %v2788_v14 }
0x1851   :  { %2809 = vst.msk [vmem:[%s4570_s15 + $0x8] sm:$0xff] %vm2807_vm6, %v2794_v32 }
0x1852   :  { %2808 = vst.msk [vmem:[%s4570_s15] sm:$0xff] %vm2807_vm6, %v2789_v48  ;;  %v3280_v31 = vpop.f32.mrb[38].mxu1 }
0x1853   :  { %v2804_v39 = vadd.f32 %v3280_v31, %v2921_v51  ;;  %v2798_v59 = vpop.f32.mrb[39].mxu1 }
0x1854   :  { %v2799_v20 = vadd.f32 %v2921_v51, %v2798_v59 }
0x1855   :  { %2811 = vst.msk [vmem:[%s4570_s15 + $0x18] sm:$0xff] %vm2807_vm6, %v2804_v39 }
0x1856   :  { %2810 = vst.msk [vmem:[%s4570_s15 + $0x10] sm:$0xff] %vm2807_vm6, %v2799_v20 }

</bundles_post_ra>
